<compile_context>
chip_gen: v6e
topology: v6e:2x2x1
jax: 0.10.0
libtpu: 0.0.40
codegen_flags: <defaults>
</compile_context>

<pallas_src>
import math

import jax
import jax.numpy as jnp
from jax.experimental import pallas as pl
from jax.experimental.pallas import tpu as pltpu

F32 = jnp.float32
BF16 = jnp.bfloat16

_TK = 4096            # K tile for weight-streaming matmuls (fc_picture at real resolution)
_K_SINGLE_MAX = 4096  # K values up to this run as a single full-K block


def _round_up(x, m):
    return ((x + m - 1) // m) * m


def _chip_vmem_limit():
    """Chip-aware scoped-VMEM budget: leave headroom on 64-MiB v7x, use more on 128-MiB parts."""
    cap = 64 * 1024 * 1024
    try:
        info = pltpu.get_tpu_info()
        c = getattr(info, "vmem_capacity_bytes", None)
        if c:
            cap = int(c)
    except Exception:
        pass
    return 100 * 1024 * 1024 if cap >= 100 * 1024 * 1024 else 40 * 1024 * 1024


_VMEM_LIMIT = _chip_vmem_limit()


def _cparams(sem):
    return pltpu.CompilerParams(dimension_semantics=sem,
                                vmem_limit_bytes=_VMEM_LIMIT)


def _pick_m_tile(M, tm):
    """Pick an M tile, preferring one that divides M exactly (skips the HBM re-pad copy)."""
    if M % 8 == 0 and M >= 64:
        cand = min(tm, M)
        cand -= cand % 8
        while cand >= 64:
            if M % cand == 0:
                return cand, M
            cand -= 8
    if M % 8 == 0 and M <= tm:
        return M, M
    tm_eff = min(tm, _round_up(M, 8))
    return tm_eff, _round_up(M, tm_eff)


# --------------------------------------------------------------------------
# Generic K-tiled matmul kernel: bf16 MXU, f32 accumulation,
# fused BN+ReLU prologue and plain / +bias / BN+ReLU epilogue.
# --------------------------------------------------------------------------

def _make_mm_kernel(n_pro, n_ep, k_axis):
    n_in = 2 + n_pro + n_ep

    def kernel(*refs):
        a_ref, w_ref = refs[0], refs[1]
        pro = refs[2:2 + n_pro]
        ep = refs[2 + n_pro:n_in]
        o_ref, acc_ref = refs[n_in], refs[n_in + 1]

        @pl.when(pl.program_id(k_axis) == 0)
        def _():
            acc_ref[...] = jnp.zeros_like(acc_ref)

        if n_pro:  # fused BN(inference affine) + ReLU prologue (f32 math, bf16 to the MXU)
            a = jnp.maximum(a_ref[...].astype(jnp.float32) * pro[0][...] + pro[1][...],
                            0.0).astype(a_ref.dtype)
        else:
            a = a_ref[...]
        acc_ref[...] += jnp.dot(a, w_ref[...], preferred_element_type=jnp.float32)

        @pl.when(pl.program_id(k_axis) == pl.num_programs(k_axis) - 1)
        def _():
            r = acc_ref[...]
            if n_ep == 1:        # + bias
                r = r + ep[0][...]
            elif n_ep == 2:      # BN affine + ReLU
                r = jnp.maximum(r * ep[0][...] + ep[1][...], 0.0)
            o_ref[...] = r.reshape(o_ref.shape).astype(o_ref.dtype)

    return kernel


def prep_linear(w, *, bias=None, scale=None, shift=None):
    """Pre-pad (K to the tile grid) and bf16-cast a [K, N] weight once at init time.

    The fused epilogue is inferred from which extra arrays are stored:
      ()              -> plain matmul
      (bias,)         -> matmul + bias
      (scale, shift)  -> matmul -> BN affine -> ReLU (inference BN fused into epilogue)
    """
    K, N = w.shape
    # Pad tiled K to a multiple of 2*_TK so the two-TC K-split always has an even tile count.
    Kp = K if K <= _K_SINGLE_MAX else _round_up(K, 2 * _TK)
    w_bf = w.astype(BF16)
    if Kp != K:
        w_bf = jnp.zeros((Kp, N), BF16).at[:K, :].set(w_bf)
    if scale is not None:
        ep = (scale.reshape(1, N).astype(F32), shift.reshape(1, N).astype(F32))
    elif bias is not None:
        ep = (bias.reshape(1, N).astype(F32),)
    else:
        ep = ()
    return {"w": w_bf, "ep": ep}


def pallas_matmul(a, prep, out_dtype=F32, tm=256, prologue=None):
    """a: [M, K] @ prepped weight [Kp, N], optional fused BN+ReLU prologue on `a`."""
    M, K = a.shape
    Kp, N = prep["w"].shape
    ep = prep["ep"]
    tk = Kp if Kp <= _K_SINGLE_MAX else _TK
    a = a.astype(BF16)
    tm_eff, Mp = _pick_m_tile(M, tm)
    if (Mp, Kp) != (M, K):
        a = jnp.zeros((Mp, Kp), BF16).at[:M, :K].set(a)

    pro = ()
    if prologue is not None:
        s_in = prologue[0].reshape(1, K).astype(F32)
        t_in = prologue[1].reshape(1, K).astype(F32)
        if Kp != K:
            s_in = jnp.zeros((1, Kp), F32).at[:, :K].set(s_in)
            t_in = jnp.zeros((1, Kp), F32).at[:, :K].set(t_in)
        pro = (s_in, t_in)

    n_m, n_k = Mp // tm_eff, Kp // tk

    # Weight-streaming case (single M tile, K-tiled): split K across a leading "parallel"
    # axis so on v7x both TensorCores' DMA engines stream half the weight; tiny final add
    # + epilogue happen outside the kernel.  No effect on 1-TC v5e/v6e.
    if n_m == 1 and n_k >= 2 and n_k % 2 == 0 and not pro:
        half = n_k // 2
        partial = pl.pallas_call(
            _make_mm_kernel(0, 0, 2),
            out_shape=jax.ShapeDtypeStruct((2, Mp, N), jnp.float32),
            grid=(2, 1, half),
            in_specs=[pl.BlockSpec((tm_eff, tk), lambda p, i, k: (i, p * half + k)),
                      pl.BlockSpec((tk, N), lambda p, i, k: (p * half + k, 0))],
            out_specs=pl.BlockSpec((1, tm_eff, N), lambda p, i, k: (p, i, 0)),
            scratch_shapes=[pltpu.VMEM((tm_eff, N), jnp.float32)],
            compiler_params=_cparams(("parallel", "parallel", "arbitrary")),
        )(a, prep["w"])
        r = partial[0] + partial[1]
        if len(ep) == 1:
            r = r + ep[0]
        elif len(ep) == 2:
            r = jnp.maximum(r * ep[0] + ep[1], 0.0)
        out = r.astype(out_dtype)
        return out if Mp == M else out[:M]

    in_specs = [pl.BlockSpec((tm_eff, tk), lambda i, k: (i, k)),
                pl.BlockSpec((tk, N), lambda i, k: (k, 0))]
    in_specs += [pl.BlockSpec((1, tk), lambda i, k: (0, k)) for _ in pro]
    in_specs += [pl.BlockSpec((1, N), lambda i, k: (0, 0)) for _ in ep]
    out = pl.pallas_call(
        _make_mm_kernel(len(pro), len(ep), 1),
        out_shape=jax.ShapeDtypeStruct((Mp, N), out_dtype),
        grid=(n_m, n_k),
        in_specs=in_specs,
        out_specs=pl.BlockSpec((tm_eff, N), lambda i, k: (i, 0)),
        scratch_shapes=[pltpu.VMEM((tm_eff, N), jnp.float32)],
        compiler_params=_cparams(("parallel", "arbitrary")),
    )(a, prep["w"], *pro, *ep)
    return out if Mp == M else out[:M]


# --------------------------------------------------------------------------
# Standalone fused BatchNorm(inference affine) + ReLU  (only the final bn before avg_pool 8)
# --------------------------------------------------------------------------

def _bn_relu_kernel(x_ref, s_ref, t_ref, o_ref):
    x = x_ref[...].astype(jnp.float32)
    o_ref[...] = jnp.maximum(x * s_ref[...] + t_ref[...], 0.0).astype(o_ref.dtype)


def pallas_bn_relu(x2d, scale, shift, tm=512):
    M, C = x2d.shape
    tm_eff, Mp = _pick_m_tile(M, tm)
    x_p = x2d if Mp == M else jnp.zeros((Mp, C), x2d.dtype).at[:M].set(x2d)
    s = scale.reshape(1, C).astype(F32)
    t = shift.reshape(1, C).astype(F32)
    out = pl.pallas_call(
        _bn_relu_kernel,
        out_shape=jax.ShapeDtypeStruct((Mp, C), BF16),
        grid=(Mp // tm_eff,),
        in_specs=[pl.BlockSpec((tm_eff, C), lambda i: (i, 0)),
                  pl.BlockSpec((1, C), lambda i: (0, 0)),
                  pl.BlockSpec((1, C), lambda i: (0, 0))],
        out_specs=pl.BlockSpec((tm_eff, C), lambda i: (i, 0)),
        compiler_params=_cparams(("parallel",)),
    )(x_p, s, t)
    return out if Mp == M else out[:M]


# --------------------------------------------------------------------------
# 3x3 convolution: all 9 taps accumulated in-kernel (bf16 MXU) from one haloed image block
# --------------------------------------------------------------------------

def _conv3x3_kernel(x_ref, w_ref, o_ref):
    # x_ref: (1, H+2, W+2, Cin) haloed bf16 image (single HBM read, stays bf16 in VMEM)
    # w_ref: (9, Cin, Cout) bf16 taps, tap index t = dh*3 + dw
    # o_ref: (1, H, W, Cout)
    H, W, Cout = o_ref.shape[1], o_ref.shape[2], o_ref.shape[3]
    Cin = x_ref.shape[3]
    x = x_ref[0]                                     # bf16, resident in VMEM
    acc = jnp.zeros((H * W, Cout), jnp.float32)
    for t in range(9):                               # unrolled tap loop, bf16 x bf16 MXU
        dh, dw = t // 3, t % 3
        win = x[dh:dh + H, dw:dw + W, :].reshape(H * W, Cin)
        acc = acc + jnp.dot(win, w_ref[t], preferred_element_type=jnp.float32)
    o_ref[0] = acc.reshape(H, W, Cout).astype(o_ref.dtype)


def conv3x3(x_nhwc, w9):
    """3x3 / stride 1 / pad 1 / no bias. No HBM im2col: the 9 shifted windows are
    sliced from a single VMEM-resident haloed image per grid step."""
    B, H, W, C = x_nhwc.shape
    Cout = w9.shape[-1]
    xp = jnp.pad(x_nhwc.astype(BF16), ((0, 0), (1, 1), (1, 1), (0, 0)))
    # TODO(synk): for very large resolutions on v7x (64 MiB VMEM), tile rows with a halo
    # via manual DMA (pl.ANY + make_async_copy) instead of one full padded image per step,
    # and combine taps via a single (Cin, 9*Cout) dot + pltpu.roll to avoid the 9 window
    # relayout copies and the Cout-wide masked stores.
    return pl.pallas_call(
        _conv3x3_kernel,
        out_shape=jax.ShapeDtypeStruct((B, H, W, Cout), BF16),
        grid=(B,),
        in_specs=[pl.BlockSpec((1, H + 2, W + 2, C), lambda b: (b, 0, 0, 0)),
                  pl.BlockSpec((9, C, Cout), lambda b: (0, 0, 0))],
        out_specs=pl.BlockSpec((1, H, W, Cout), lambda b: (b, 0, 0, 0)),
        compiler_params=_cparams(("parallel",)),
    )(xp, w9.astype(BF16))


# --------------------------------------------------------------------------
# LSTM: whole time loop inside one pallas_call (h in resident output, c in scratch)
# --------------------------------------------------------------------------

def _lstm_kernel(xg_ref, whh_ref, h_ref, c_ref):
    t = pl.program_id(0)
    H = h_ref.shape[-1]

    @pl.when(t == 0)
    def _():
        h_ref[...] = jnp.zeros_like(h_ref)
        c_ref[...] = jnp.zeros_like(c_ref)

    # bf16 gate stream + bf16 h-projection on the MXU; gate/c/h math stays f32.
    gates = xg_ref[0].astype(jnp.float32) + jnp.dot(
        h_ref[...].astype(jnp.bfloat16), whh_ref[...],
        preferred_element_type=jnp.float32)
    i = jax.nn.sigmoid(gates[:, 0:H])
    f = jax.nn.sigmoid(gates[:, H:2 * H])
    g = jnp.tanh(gates[:, 2 * H:3 * H])
    o = jax.nn.sigmoid(gates[:, 3 * H:4 * H])
    c_new = f * c_ref[...] + i * g
    c_ref[...] = c_new
    h_ref[...] = o * jnp.tanh(c_new)


def pallas_lstm_last_hidden(x, lstm_p):
    """PyTorch-semantics single-layer batch_first LSTM, zero initial state.
    x: [B, T, I]. Returns h_T: [B, H]."""
    B, T, I = x.shape
    H = lstm_p["w_hh_t"].shape[0]
    # Input projection (+ combined b_ih + b_hh) for all timesteps in one MXU matmul.
    xg = pallas_matmul(x.reshape(B * T, I), lstm_p["x_proj"], out_dtype=BF16)
    xg = xg.reshape(B, T, 4 * H)
    Bp = _round_up(B, 8)
    if Bp != B:
        xg = jnp.zeros((Bp, T, 4 * H), BF16).at[:B].set(xg)
    xg_t = jnp.swapaxes(xg, 0, 1)                      # [T, Bp, 4H] time-major, bf16
    h = pl.pallas_call(
        _lstm_kernel,
        out_shape=jax.ShapeDtypeStruct((Bp, H), F32),
        grid=(T,),
        in_specs=[pl.BlockSpec((1, Bp, 4 * H), lambda t: (t, 0, 0)),
                  pl.BlockSpec((H, 4 * H), lambda t: (0, 0))],
        out_specs=pl.BlockSpec((Bp, H), lambda t: (0, 0)),
        scratch_shapes=[pltpu.VMEM((Bp, H), jnp.float32)],
        compiler_params=_cparams(("arbitrary",)),
    )(xg_t, lstm_p["w_hh_t"])
    return h[:B]


# --------------------------------------------------------------------------
# NHWC wrappers
# --------------------------------------------------------------------------

def conv1x1(x_nhwc, prep, prologue=None):
    B, H, W, C = x_nhwc.shape
    out = pallas_matmul(x_nhwc.reshape(B * H * W, C), prep, out_dtype=BF16,
                        prologue=prologue)
    return out.reshape(B, H, W, -1)


def bn_relu_nhwc(x_nhwc, bn):
    B, H, W, C = x_nhwc.shape
    out = pallas_bn_relu(x_nhwc.reshape(B * H * W, C), bn[0], bn[1])
    return out.reshape(B, H, W, C)


def avg_pool_nhwc(x_nhwc, k):
    B, H, W, C = x_nhwc.shape
    return x_nhwc.reshape(B, H // k, k, W // k, k, C).astype(F32).mean(axis=(2, 4))


# --------------------------------------------------------------------------
# Parameter initialization (deterministic, mirrors the PyTorch __init__ shapes)
# --------------------------------------------------------------------------

def _make_bn(c, eps=1e-5):
    gamma = jnp.ones((c,), F32)
    beta = jnp.zeros((c,), F32)
    mean = jnp.zeros((c,), F32)
    var = jnp.ones((c,), F32)
    scale = gamma / jnp.sqrt(var + eps)
    shift = beta - mean * scale
    return scale, shift


def _conv3x3_w9(key, cin, cout):
    std = math.sqrt(2.0 / (3 * 3 * cout))
    return (jax.random.normal(key, (9, cin, cout), F32) * std).astype(BF16)


def _conv1x1_w(key, cin, cout):
    std = math.sqrt(2.0 / cout)
    return jax.random.normal(key, (cin, cout), F32) * std


def _linear_w(key, fin, fout):
    bound = 1.0 / math.sqrt(fin)
    w = jax.random.uniform(key, (fin, fout), F32, minval=-bound, maxval=bound)
    b = jnp.zeros((fout,), F32)   # Linear biases zeroed in the module's init loop
    return w, b


def init_params(key, img_hw, pic_batch, num_classes=2, growth_rate=12,
                depth=50, reduction=0.5):
    n = int((depth - 4) / 3 / 2)        # bottleneck => 7 layers per dense block
    in_planes = 2 * growth_rate
    keys = iter(jax.random.split(key, 512))
    params = {"conv1_w9": _conv3x3_w9(next(keys), 3, in_planes)}

    def dense_block(in_pl):
        layers = []
        for i in range(n):
            cin = in_pl + i * growth_rate
            inter = growth_rate * 4
            bn2_scale, bn2_shift = _make_bn(inter)
            layers.append({
                # bn1+ReLU fused as the 1x1 conv's prologue, bn2+ReLU as its epilogue.
                "bn1": _make_bn(cin),
                "conv1": prep_linear(_conv1x1_w(next(keys), cin, inter),
                                     scale=bn2_scale, shift=bn2_shift),
                "conv2_w9": _conv3x3_w9(next(keys), inter, growth_rate),
            })
        return layers, in_pl + n * growth_rate

    params["block1"], in_planes = dense_block(in_planes)
    t1 = int(math.floor(in_planes * reduction))
    params["trans1"] = {"bn": _make_bn(in_planes),
                        "conv": prep_linear(_conv1x1_w(next(keys), in_planes, t1))}
    in_planes = t1
    params["block2"], in_planes = dense_block(in_planes)
    t2 = int(math.floor(in_planes * reduction))
    params["trans2"] = {"bn": _make_bn(in_planes),
                        "conv": prep_linear(_conv1x1_w(next(keys), in_planes, t2))}
    in_planes = t2
    params["block3"], in_planes = dense_block(in_planes)
    params["bn_final"] = _make_bn(in_planes)           # in_planes == 153

    n_units = 128
    n_inputs = 18
    k = 1.0 / math.sqrt(n_units)
    w_ih = jax.random.uniform(next(keys), (4 * n_units, n_inputs), F32, -k, k)
    w_hh = jax.random.uniform(next(keys), (4 * n_units, n_units), F32, -k, k)
    b_ih = jax.random.uniform(next(keys), (4 * n_units,), F32, -k, k)
    b_hh = jax.random.uniform(next(keys), (4 * n_units,), F32, -k, k)
    params["lstm"] = {
        "x_proj": prep_linear(w_ih.T, bias=b_ih + b_hh),
        "w_hh_t": w_hh.T.astype(BF16),
    }

    # TODO(synk): the original module hardcodes Linear(310590,128)/Linear(406980,128) for
    # full-resolution UBFC-Phys inputs; fc in-dims here follow the small synthetic input
    # resolution (flatten -> Linear semantics are identical, and the K-tiled matmul
    # streams arbitrarily large weights through VMEM in 4096-row tiles).
    h_out = img_hw // 32                # two /2 transition pools + final /8 pool
    fc_pic_in = pic_batch * in_planes * h_out * h_out
    fc_loc_in = in_planes * h_out * h_out
    w, b = _linear_w(next(keys), fc_pic_in, n_units)
    params["fc_picture"] = prep_linear(w, bias=b)
    w, b = _linear_w(next(keys), fc_loc_in, n_units)
    params["fc_loc"] = prep_linear(w, bias=b)
    w, b = _linear_w(next(keys), n_units * 5, num_classes)
    params["fc_sum"] = prep_linear(w, bias=b)
    return params


# --------------------------------------------------------------------------
# Forward pass
# --------------------------------------------------------------------------

def _bottleneck(p, x):
    # bn1+ReLU (prologue) -> 1x1 conv -> bn2+ReLU (epilogue): one fused matmul kernel.
    h = conv1x1(x, p["conv1"], prologue=p["bn1"])
    out = conv3x3(h, p["conv2_w9"])
    # TODO(synk): write conv outputs directly into a preallocated lane-padded channel slab
    # (out_specs offset + input_output_aliases) to remove this per-layer XLA concat copy
    # and the 12-lane masked stores.
    return jnp.concatenate([x, out], axis=-1)


def _transition(p, x):
    # bn+ReLU fused as the 1x1 conv's prologue: no standalone BN HBM round trip.
    h = conv1x1(x, p["conv"], prologue=p["bn"])
    return avg_pool_nhwc(h, 2).astype(BF16)


def densenet_trunk(params, x_nchw):
    x = jnp.transpose(x_nchw, (0, 2, 3, 1)).astype(BF16)   # NCHW -> NHWC, bf16 trunk
    out = conv3x3(x, params["conv1_w9"])
    for p in params["block1"]:
        out = _bottleneck(p, out)
    out = _transition(params["trans1"], out)
    for p in params["block2"]:
        out = _bottleneck(p, out)
    out = _transition(params["trans2"], out)
    for p in params["block3"]:
        out = _bottleneck(p, out)
    out = bn_relu_nhwc(out, params["bn_final"])
    out = avg_pool_nhwc(out, 8)                             # f32
    return jnp.transpose(out, (0, 3, 1, 2))                 # NCHW for PyTorch flatten order


def forward(params, mouth, eye_l, eye_r, xyz, ippg):
    # mouth / eye_l / eye_r: [T, B, 3, H, W]; xyz: [T, 3, H, W]; ippg: [T, S, 18]
    T, B, Cin, H, W = mouth.shape
    # All trunk calls use inference-mode BN (running stats), so the per-item loops of
    # feature_extract / feature_extract_loc batch equivalently into one trunk pass.
    imgs = jnp.concatenate([
        mouth.reshape(T * B, Cin, H, W),
        eye_l.reshape(T * B, Cin, H, W),
        eye_r.reshape(T * B, Cin, H, W),
        xyz,
    ], axis=0)
    feats = densenet_trunk(params, imgs)                    # [3*T*B + T, 153, h, w]
    n_pic = T * B

    # mouth / eyeLeft / eyeRight share fc_picture -> one matmul streams the weight once.
    f_pics = feats[:3 * n_pic].reshape(3 * T, -1)           # flatten (B, C, h, w) per clip
    feat_pics = pallas_matmul(f_pics, params["fc_picture"], out_dtype=F32)
    feat_pics = feat_pics.reshape(3, T, -1)

    f_xyz = feats[3 * n_pic:].reshape(T, -1)                # per-sample flatten
    feat_xyz = pallas_matmul(f_xyz, params["fc_loc"], out_dtype=F32)

    feat_ippg = pallas_lstm_last_hidden(ippg.astype(F32), params["lstm"])

    out = jnp.concatenate(
        [feat_pics[0], feat_pics[1], feat_pics[2], feat_xyz, feat_ippg], axis=1)
    return pallas_matmul(out, params["fc_sum"], out_dtype=F32)   # [T, num_classes]


# --------------------------------------------------------------------------

if __name__ == "__main__":
    key = jax.random.PRNGKey(0)
    k1, k2, k3, k4, k5, kp = jax.random.split(key, 6)

    # Self-test of the K-tiled, two-TC-split weight-streaming matmul path (the tiny model
    # shapes below keep every fc K under the single-block threshold, so exercise it here).
    ka, kw = jax.random.split(jax.random.PRNGKey(1))
    a_t = jax.random.normal(ka, (8, 12000), F32)
    w_t = jax.random.normal(kw, (12000, 128), F32) * 0.02
    b_t = jnp.arange(128, dtype=F32) * 0.01
    got = pallas_matmul(a_t, prep_linear(w_t, bias=b_t), out_dtype=F32)
    want = a_t @ w_t + b_t
    assert jnp.allclose(got, want, rtol=5e-2, atol=1e-1), \
        float(jnp.max(jnp.abs(got - want)))

    T, B, H, W = 2, 1, 32, 32     # small synthetic shapes
    SEQ = 8
    mouth = jax.random.normal(k1, (T, B, 3, H, W), F32)
    eye_l = jax.random.normal(k2, (T, B, 3, H, W), F32)
    eye_r = jax.random.normal(k3, (T, B, 3, H, W), F32)
    xyz = jax.random.normal(k4, (T, 3, H, W), F32)
    ippg = jax.random.normal(k5, (T, SEQ, 18), F32)

    params = init_params(kp, img_hw=H, pic_batch=B)

    fwd = jax.jit(forward)
    out = fwd(params, mouth, eye_l, eye_r, xyz, ippg)
    jax.block_until_ready(out)
    assert out.shape == (T, 2) and out.dtype == jnp.float32
    print("KERNEL_OK")
</pallas_src>

<mosaic_0001>
module attributes {stable_mosaic.version = 11 : i64} {
  func.func @kernel(%arg0: i32, %arg1: i32, %arg2: i32, %arg3: memref<8x4096xbf16, #tpu.memory_space<vmem>>, %arg4: memref<4096x128xbf16, #tpu.memory_space<vmem>>, %arg5: memref<1x8x128xf32, #tpu.memory_space<vmem>>, %arg6: memref<8x128xf32, #tpu.memory_space<vmem>>) attributes {dimension_semantics = [#tpu.dimension_semantics<parallel>, #tpu.dimension_semantics<parallel>, #tpu.dimension_semantics<arbitrary>], iteration_bounds = array<i64: 2, 1, 2>, scalar_prefetch = 0 : i64, scratch_operands = 1 : i64, tpu.core_type = #tpu.core_type<tc>, window_params = [{transform_indices = @transform_0, window_bounds = array<i64: 8, 4096>}, {transform_indices = @transform_1, window_bounds = array<i64: 4096, 128>}, {transform_indices = @transform_2, window_bounds = array<i64: 1, 8, 128>}]} {
    %c0_i32 = arith.constant 0 : i32
    %0 = arith.cmpi eq, %arg2, %c0_i32 : i32
    %1 = arith.extui %0 : i1 to i32
    %c0_i32_0 = arith.constant 0 : i32
    %2 = arith.cmpi ne, %1, %c0_i32_0 : i32
    scf.if %2 {
      %cst_9 = arith.constant 0.000000e+00 : f32
      %12 = vector.broadcast %cst_9 : f32 to vector<8x128xf32>
      %c0_10 = arith.constant 0 : index
      %c0_11 = arith.constant 0 : index
      %13 = vector.load %arg6[%c0_10, %c0_11] : memref<8x128xf32, #tpu.memory_space<vmem>>, vector<8x128xf32>
      tpu.vector_store %arg6[%c0_10, %c0_11], %12 {strides = array<i32>} : memref<8x128xf32, #tpu.memory_space<vmem>>, vector<8x128xf32>,
    } else {
    }
    %c0 = arith.constant 0 : index
    %c0_1 = arith.constant 0 : index
    %3 = vector.load %arg3[%c0, %c0_1] : memref<8x4096xbf16, #tpu.memory_space<vmem>>, vector<8x4096xbf16>
    %c0_2 = arith.constant 0 : index
    %c0_3 = arith.constant 0 : index
    %4 = vector.load %arg6[%c0_2, %c0_3] : memref<8x128xf32, #tpu.memory_space<vmem>>, vector<8x128xf32>
    %c0_4 = arith.constant 0 : index
    %c0_5 = arith.constant 0 : index
    %5 = vector.load %arg4[%c0_4, %c0_5] : memref<4096x128xbf16, #tpu.memory_space<vmem>>, vector<4096x128xbf16>
    %cst = arith.constant dense<0.000000e+00> : vector<8x128xf32>
    %6 = tpu.matmul %3, %5, %cst {dimension_numbers = #tpu.dot_dimension_numbers<[1], [0], [0], [1], [0, 0, 1, 1], [], []>} : vector<8x4096xbf16>, vector<4096x128xbf16>, vector<8x128xf32> -> vector<8x128xf32>
    %7 = arith.addf %4, %6 : vector<8x128xf32>
    %c0_6 = arith.constant 0 : index
    %c0_7 = arith.constant 0 : index
    %8 = vector.load %arg6[%c0_6, %c0_7] : memref<8x128xf32, #tpu.memory_space<vmem>>, vector<8x128xf32>
    tpu.vector_store %arg6[%c0_6, %c0_7], %7 {strides = array<i32>} : memref<8x128xf32, #tpu.memory_space<vmem>>, vector<8x128xf32>,
    %c1_i32 = arith.constant 1 : i32
    %9 = arith.cmpi eq, %arg2, %c1_i32 : i32
    %10 = arith.extui %9 : i1 to i32
    %c0_i32_8 = arith.constant 0 : i32
    %11 = arith.cmpi ne, %10, %c0_i32_8 : i32
    scf.if %11 {
      %c0_9 = arith.constant 0 : index
      %c0_10 = arith.constant 0 : index
      %12 = vector.load %arg6[%c0_9, %c0_10] : memref<8x128xf32, #tpu.memory_space<vmem>>, vector<8x128xf32>
      %13 = vector.shape_cast %12 : vector<8x128xf32> to vector<1x8x128xf32>
      %c0_11 = arith.constant 0 : index
      %c0_12 = arith.constant 0 : index
      %c0_13 = arith.constant 0 : index
      %14 = vector.load %arg5[%c0_11, %c0_12, %c0_13] : memref<1x8x128xf32, #tpu.memory_space<vmem>>, vector<1x8x128xf32>
      tpu.vector_store %arg5[%c0_11, %c0_12, %c0_13], %13 {strides = array<i32>} : memref<1x8x128xf32, #tpu.memory_space<vmem>>, vector<1x8x128xf32>,
    } else {
    }
    return
  }
  func.func @transform_0(%arg0: i32, %arg1: i32, %arg2: i32) -> (i32, i32) {
    %c2_i32 = arith.constant 2 : i32
    %0 = arith.muli %arg0, %c2_i32 : i32
    %1 = arith.addi %0, %arg2 : i32
    %c0_i32 = arith.constant 0 : i32
    return %arg1, %1 : i32, i32
  }
  func.func @transform_1(%arg0: i32, %arg1: i32, %arg2: i32) -> (i32, i32) {
    %c2_i32 = arith.constant 2 : i32
    %0 = arith.muli %arg0, %c2_i32 : i32
    %1 = arith.addi %0, %arg2 : i32
    %c0_i32 = arith.constant 0 : i32
    %c0_i32_0 = arith.constant 0 : i32
    return %1, %c0_i32 : i32, i32
  }
  func.func @transform_2(%arg0: i32, %arg1: i32, %arg2: i32) -> (i32, i32, i32) {
    %c0_i32 = arith.constant 0 : i32
    %c0_i32_0 = arith.constant 0 : i32
    return %arg0, %arg1, %c0_i32 : i32, i32, i32
  }
}

</mosaic_0001>

<bundles_post_ra>
// kernel: tpu_custom_call.1
= control target key start
LH: loop header
LB: loop body
LE: loop exit
PB: predicated region body
PF: predicated region fallthrough
CT: control target
= control target key end

     0   :  { %s4977_s0 = inlined_call_operand.hbm [shape: bf16[8,16384], index: 0, kind: input, shape index: {}]   ;;  %s4978_s1 = inlined_call_operand.hbm [shape: bf16[16384,128], index: 1, kind: input, shape index: {}]   ;;  %s4979_s2 = inlined_call_operand.hbm [shape: f32[2,8,128], index: 2, kind: output, shape index: {}]  }
   0x1   :  { %4983 = sst [smem:[#allocation15_spill]] %s4977_s0 }
   0x2   :  { %7 = vsyncpa [#allocation4], 0 }
   0x3   :  { %9 = vsyncpa [#allocation4 + $0x1], 0 }
   0x4   :  { %10 = vsyncpa [#allocation7], 0 }
   0x5   :  { %12 = vsyncpa [#allocation7 + $0x1], 0 }
   0x6   :  { %13 = vsyncpa [#allocation5], 0 }
   0x7   :  { %15 = vsyncpa [#allocation5 + $0x1], 0  ;;  %s4473_s9 = smov 0   ;;  %s4475_s10 = smov 0  }
   0x8   :  { %s4477_s11 = smov 0   ;;  %s4479_s12 = smov 0  }
   0x9   :  { %s4481_s13 = smov 0   ;;  %s4483_s14 = smov 0  }
   0xa   :  { %s4485_s15 = smov 0   ;;  %s4487_s16 = smov 0  }
   0xb   :  { %s4489_s17 = smov 0   ;;  %s4491_s18 = smov 0  }
   0xc   :  { %s4493_s19 = smov 0  }
   0xd LB: > { %4984 = sst [smem:[#allocation12_spill]] %s4446_s18  ;;  %s3204_s20 = sadd.s32 4294967295, %s4450_s19   ;;  %s4450_s19 = sphi %s4493_s19, %s21_s19   ;;  %s4446_s18 = sphi %s4491_s18, %s4996_s18   ;;  %s4442_s17 = sphi %s4489_s17, %s5004_s17   ;;  %s4438_s16 = sphi %s4487_s16, %s4994_s16   ;;  %s4434_s15 = sphi %s4485_s15, %s5003_s15   ;;  %s4430_s14 = sphi %s4483_s14, %s5002_s14   ;;  %s4426_s13 = sphi %s4481_s13, %s5001_s13   ;;  %s4422_s12 = sphi %s4479_s12, %s5000_s12   ;;  %s4418_s11 = sphi %s4477_s11, %s4999_s11   ;;  %s4414_s10 = sphi %s4475_s10, %s4998_s10   ;;  %s4410_s9 = sphi %s4473_s9, %s4997_s9  }
   0xe   : > { %s3205_s21 = sadd.s32 4294967294, %s4450_s19   ;;  %s33_s22 = sadd.s32 1, %s4442_s17 }
   0xf   : > { %s40_s23 = sadd.s32 1, %s4446_s18  ;;  %p34_p0 = scmp.ge.s32.totalorder %s33_s22, 2 }
  0x10   : > { %s3206_s24 = sshll.u32 %s4446_s18, 1  ;;  %s53_s26 = sadd.s32 1, %s4430_s14 }
  0x11   : > { %s4532_s25 = sadd.s32 %s4442_s17, %s3206_s24  ;;  %s5006_s22 = smov (%p34_p0, %s33_s22), 0 }
  0x12   : > { %4985 = sst [smem:[#allocation13_spill]] %s5006_s22  ;;  %s5008_s23 = smov (!%p34_p0, %s40_s23), %s4446_s18 }
  0x13   : > { %p60_p1 = scmp.ne.s32.totalorder %s4430_s14, %s4426_s13  ;;  %p61_p2 = scmp.eq.s32.totalorder %s4450_s19, 0 }
  0x14   : > { %p42_p3 = scmp.ge.s32.totalorder %s5008_s23, 2  ;;  %p66_p4 = scmp.ne.s32.totalorder %s4426_s13, %s4422_s12 }
  0x15   : > { %p4542_p5 = por %p61_p2, %p60_p1  ;;  %p67_p6 = scmp.eq.s32.totalorder %s3204_s20, 0 }
  0x16   : > { %s5010_s23 = smov (%p42_p3, %s5008_s23), 0  ;;  %s111_s29 = sadd.s32 1, %s4418_s11 }
  0x17   : > { %4987 = sst [smem:[#allocation14_spill]] %s5010_s23  ;;  %p4548_p7 = por %p67_p6, %p66_p4 }
  0x18   : > { %s3207_s30 = sshll.u32 %s5010_s23, 1  ;;  %s106_s3 = ssub.s32 %s4446_s18, %s5010_s23 }
  0x19   : > { %s47_s4 = sadd.s32 %s3207_s30, %s5006_s22  ;;  %p109_p8 = scmp.eq.s32.totalorder %s106_s3, 0 }
  0x1a   : > { %s49_s5 = ssub.s32 %s4532_s25, %s47_s4  ;;  %p121_p9 = scmp.ne.s32.totalorder %s4418_s11, %s4414_s10 }
  0x1b   : > { %p51_p10 = scmp.eq.s32.totalorder %s49_s5, 0  ;;  %p122_p11 = scmp.eq.s32.totalorder %s3204_s20, 3 }
  0x1c   : > { %s4561_s6 = scalar_select %p109_p8, %s4418_s11, %s111_s29  }
  0x1d   : > { %s4564_s7 = scalar_select %p51_p10, %s4430_s14, %s53_s26  }
  0x1e   : > { %p4566_p12 = por %p122_p11, %p121_p9  ;;  %p127_p13 = scmp.ne.s32.totalorder %s4414_s10, %s4410_s9 }
  0x1f   : > { %p128_p0 = scmp.eq.s32.totalorder %s3205_s21, 3  ;;  %p3889_p1 = scmp.lt.s32.totalorder %s4450_s19, 4 }
  0x20   : > { %s4576_s12 = sand.u32 1, %s4430_s14   ;;  %s3518_s29 = sshll.u32 %s4532_s25, 11 }
  0x21   : > { %p4578_p2 = por %p128_p0, %p127_p13  ;;  %s3212_s24 = sshll.u32 %s4576_s12, 7 }
  0x22   : > { %s4991_s0 = sld [smem:[#allocation15_spill]]  ;;  %s152_s4 = scalar_lea.vmem [#allocation3], %s3212_s24 }
  0x23   : > { %s164_s5 = sshll.u32 %s152_s4, 4  ;;  %p4589_p3 = pnand %p3889_p1, %p4542_p5  ;;  %s165_s5 = int_to_ptr.vmem [resolvable:$true] %s164_s5 }
  0x24   : > { %s3519_s23 = sshll.u32 %s4532_s25, 15  ;;  %p3220_p4 = scmp.ge.s32.totalorder %s4450_s19, 1 }
  0x25   : > { %s149_s22 = scalar_lea.sflag [#allocation4], %s4576_s12  ;;  %p4272_p6 = pneg %p4589_p3 }
  0x26   : > { %s4283_s18 = scalar_lea.vmem %s165_s5, 2048  ;;  %s4452_s24 = smov [#allocation3]  }
  0x27   : > { %p4284_p8 = scmp.ne.s32.totalorder %s165_s5, %s4283_s18  ;;  %s4288_s27 = sshll.u32 %s4452_s24, 4  ;;  %s4289_s27 = int_to_ptr.vmem [resolvable:$false] %s4288_s27 }
  0x28   : > { %s162_s3 = scalar_lea.hbm %s4991_s0, %s3518_s29  ;;  %s4290_s29 = scalar_lea.vmem %s4289_s27, 4096 }
  0x29   : > { %p4286_p9 = pnand %p4284_p8, %p4272_p6  ;;  %p4291_p5 = scmp.lt.s32.totalorder %s165_s5, %s4289_s27 }
  0x2a   : > { %p4292_p11 = scmp.lt.s32.totalorder %s4290_s29, %s4283_s18 }
  0x2b   : > { %p4287_p10 = pneg %p4286_p9 }
  0x2c   : > { %p4293_p13 = por %p4292_p11, %p4291_p5 }
  0x2e   : > { %p4294_p0 = pnand %p4293_p13, %p4287_p10 }
  0x30   : > { %4297 = shalt.err (!%p4294_p0)
}
  0x31   : > { %3881 = dma.hbm_to_vmem [thread:$0]  (!%p4589_p3), %s162_s3, 2048, %s165_s5, %s149_s22  }
  0x32   : > { %p192_p1 = scmp.lt.s32.totalorder %s4450_s19, 5  ;;  %s3216_s25 = sshll.u32 %s4576_s12, 11 }
  0x33   : > { %s183_s4 = scalar_lea.hbm %s4978_s1, %s3519_s23  ;;  %s175_s24 = scalar_lea.vmem [#allocation6], %s3216_s25 }
  0x34   : > { %p4610_p8 = pnand %p3220_p4, %p192_p1  ;;  %s184_s27 = sshll.u32 %s175_s24, 4  ;;  %s185_s27 = int_to_ptr.vmem [resolvable:$true] %s184_s27 }
  0x35   : > { %s172_s29 = scalar_lea.sflag [#allocation7], %s4576_s12  ;;  %s4311_s0 = scalar_lea.vmem %s185_s27, 32768 }
  0x36   : > { %p4312_p9 = scmp.ne.s32.totalorder %s185_s27, %s4311_s0  ;;  %s4453_s22 = smov [#allocation6]  }
  0x37   : > { %s4316_s3 = sshll.u32 %s4453_s22, 4  ;;  %s4317_s3 = int_to_ptr.vmem [resolvable:$false] %s4316_s3 }
  0x38   : > { %p4314_p10 = pnand %p4312_p9, %p4272_p6  ;;  %s4318_s5 = scalar_lea.vmem %s4317_s3, 65536 }
  0x39   : > { %p4319_p11 = scmp.lt.s32.totalorder %s185_s27, %s4317_s3  ;;  %p4320_p13 = scmp.lt.s32.totalorder %s4318_s5, %s4311_s0 }
  0x3a   : > { %p4315_p5 = pneg %p4314_p10 }
  0x3b   : > { %p4321_p4 = por %p4320_p13, %p4319_p11 }
  0x3d   : > { %p4322_p0 = pnand %p4321_p4, %p4315_p5 }
  0x3f   : > { %4325 = shalt.err (!%p4322_p0)
}
  0x40   : > { %s4454_s23 = smov 64   ;;  %s4455_s25 = smov 4  }
  0x41   : > { %3884 = dma.hbm_to_vmem [thread:$0]  (!%p4589_p3), %s183_s4, 32768, %s185_s27, %s172_s29, %s4454_s23, %s4454_s23, %s4455_s25  }
  0x42   : > { %196 = sbr.rel (%p4610_p8) target bundleno = 577 (0x241), region = 28  ;;  %s198_s12 = sand.u32 (!%p4610_p8), 1, %s4426_s13  }
  0x43   : > { %s3221_s26 = sshll.u32 (!%p4610_p8), %s198_s12, 7  ;;  %s199_s30 = scalar_lea.sflag (!%p4610_p8), [#allocation4], %s198_s12 }
  0x44   : > { %s4623_s24 = scalar_lea.vmem (!%p4610_p8), [#allocation3], %s3221_s26 }
  0x47   : > { %4397 = dma.done.wait (%p4548_p7), %s199_s30, 2048  }
  0x48   : > { %4399 = vsyncadd (%p4548_p7), %s199_s30, 4294965248  ;;  %s3222_s0 = sshll.u32 %s198_s12, 11  ;;  %s208_s22 = scalar_lea.sflag [#allocation7], %s198_s12 }
  0x49   : > { %s4629_s21 = scalar_lea.vmem [#allocation6], %s3222_s0 }
  0x4a   : > { %4401 = dma.done.wait (%p4548_p7), %s208_s22, 32768  }
  0x4b   : > { %4403 = vsyncadd (%p4548_p7), %s208_s22, 4294934528  ;;  %s234_s4 = sand.u32 1, %s4414_s10   ;;  %p3224_p3 = scmp.ne.s32.totalorder %s4434_s15, 0 }
  0x4c   : > { %s4638_s18 = sshll.u32 %s234_s4, 3 }
  0x4d   : > { %s236_s27 = scalar_lea.vmem [#allocation8], %s4638_s18  ;;  %247 = sbr.rel (%p3224_p3) target bundleno = 84 (0x54), region = 40 }
  0x52   : > { %v4456_v0 = vmov 0.0  }
  0x53   : > { %248 = vst [vmem:[#allocation2] sm:$0xff] %v4456_v0 }
  0x54 PF: > { %v3982_v1 = vld [vmem:[%s4629_s21 + $0x78] sm:$0xff]   ;;  %v3986_v5 = vld [vmem:[%s4629_s21 + $0x70] sm:$0xff]   ;;  %v3990_v9 = vld [vmem:[%s4629_s21 + $0x68] sm:$0xff]   ;;  %p3513_p7 = scmp.ne.s32.totalorder %s4434_s15, 1 }
  0x55   : > { %v3983_v2 = vld [vmem:[%s4629_s21 + $0xf8] sm:$0xff]   ;;  %3520 = vmatprep.subr.bf16.mxu0 %v3982_v1  ;;  %v3987_v6 = vld [vmem:[%s4629_s21 + $0xf0] sm:$0xff]   ;;  %v3991_v10 = vld [vmem:[%s4629_s21 + $0xe8] sm:$0xff]  }
  0x56   : > { %v3984_v3 = vld [vmem:[%s4629_s21 + $0x38] sm:$0xff]   ;;  %3542 = vmatprep.subr.bf16.mxu1 %v3983_v2  ;;  %v3988_v7 = vld [vmem:[%s4629_s21 + $0x30] sm:$0xff]   ;;  %v3992_v11 = vld [vmem:[%s4629_s21 + $0x28] sm:$0xff]  }
  0x57   : > { %v3985_v4 = vld [vmem:[%s4629_s21 + $0xb8] sm:$0xff]   ;;  %3521 = vmatpush3.bf16.msra.mxu0 %v3984_v3  ;;  %v3989_v8 = vld [vmem:[%s4629_s21 + $0xb0] sm:$0xff]   ;;  %v3993_v12 = vld [vmem:[%s4629_s21 + $0xa8] sm:$0xff]  }
  0x58   : > { %3543 = vmatpush3.bf16.msra.mxu1 %v3985_v4  ;;  %3522 = vmatprep.subr.bf16.mxu0 %v3986_v5  ;;  %v3994_v13 = vld [vmem:[%s4629_s21 + $0x60] sm:$0xff]   ;;  %v3998_v17 = vld [vmem:[%s4629_s21 + $0x58] sm:$0xff]   ;;  %v4002_v21 = vld [vmem:[%s4629_s21 + $0x50] sm:$0xff]  }
  0x59   : > { %3544 = vmatprep.subr.bf16.mxu1 %v3987_v6  ;;  %v3995_v14 = vld [vmem:[%s4629_s21 + $0xe0] sm:$0xff]   ;;  %v3999_v18 = vld [vmem:[%s4629_s21 + $0xd8] sm:$0xff]   ;;  %v4003_v22 = vld [vmem:[%s4629_s21 + $0xd0] sm:$0xff]  }
  0x5a   : > { %v3996_v15 = vld [vmem:[%s4629_s21 + $0x20] sm:$0xff]   ;;  %v4000_v19 = vld [vmem:[%s4629_s21 + $0x18] sm:$0xff]   ;;  %v4004_v23 = vld [vmem:[%s4629_s21 + $0x10] sm:$0xff]  }
  0x5b   : > { %3523 = vmatpush3.bf16.msra.mxu0 %v3988_v7  ;;  %v3997_v16 = vld [vmem:[%s4629_s21 + $0xa0] sm:$0xff]   ;;  %v4001_v20 = vld [vmem:[%s4629_s21 + $0x98] sm:$0xff]   ;;  %v4005_v24 = vld [vmem:[%s4629_s21 + $0x90] sm:$0xff]  }
  0x5c   : > { %3545 = vmatpush3.bf16.msra.mxu1 %v3989_v8  ;;  %3524 = vmatprep.subr.bf16.mxu0 %v3990_v9  ;;  %v4006_v25 = vld [vmem:[%s4629_s21 + $0x48] sm:$0xff]   ;;  %v4010_v29 = vld [vmem:[%s4629_s21 + $0x40] sm:$0xff]   ;;  %v4018_v39 = vld [vmem:[%s4629_s21 + $0x178] sm:$0xff]  }
  0x5d   : > { %3546 = vmatprep.subr.bf16.mxu1 %v3991_v10  ;;  %v4007_v26 = vld [vmem:[%s4629_s21 + $0xc8] sm:$0xff]   ;;  %v4011_v30 = vld [vmem:[%s4629_s21 + $0xc0] sm:$0xff]   ;;  %v4019_v40 = vld [vmem:[%s4629_s21 + $0x1f8] sm:$0xff]  }
  0x5e   : > { %v4008_v27 = vld [vmem:[%s4629_s21 + $0x8] sm:$0xff]   ;;  %v4012_v31 = vld [vmem:[%s4629_s21] sm:$0xff]   ;;  %v4020_v41 = vld [vmem:[%s4629_s21 + $0x138] sm:$0xff]  }
  0x5f   : > { %3525 = vmatpush3.bf16.msra.mxu0 %v3992_v11  ;;  %v4009_v28 = vld [vmem:[%s4629_s21 + $0x88] sm:$0xff]   ;;  %v4013_v32 = vld [vmem:[%s4629_s21 + $0x80] sm:$0xff]   ;;  %v4021_v42 = vld [vmem:[%s4629_s21 + $0x1b8] sm:$0xff]  }
  0x60   : > { %3547 = vmatpush3.bf16.msra.mxu1 %v3993_v12  ;;  %3526 = vmatprep.subr.bf16.mxu0 %v3994_v13  ;;  %v249_v33 = vld [vmem:[%s4623_s24] sm:$0xff]  ;;  %v250_v34 = vld [vmem:[%s4623_s24 + $0x8] sm:$0xff]  ;;  %v4022_v43 = vld [vmem:[%s4629_s21 + $0x170] sm:$0xff]  }
  0x61   : > { %3548 = vmatprep.subr.bf16.mxu1 %v3995_v14  ;;  %v3225_v35 = vcombine.low %v249_v33, %v249_v33  ;;  %v3226_v36 = vcombine.high %v249_v33, %v249_v33  ;;  %v3227_v37 = vcombine.low %v250_v34, %v250_v34  ;;  %v3228_v38 = vcombine.high %v250_v34, %v250_v34  ;;  %v4023_v44 = vld [vmem:[%s4629_s21 + $0x1f0] sm:$0xff]   ;;  %v4026_v47 = vld [vmem:[%s4629_s21 + $0x168] sm:$0xff]   ;;  %v4030_v51 = vld [vmem:[%s4629_s21 + $0x160] sm:$0xff]  }
  0x62   : > { %v4024_v45 = vld [vmem:[%s4629_s21 + $0x130] sm:$0xff]   ;;  %v4027_v48 = vld [vmem:[%s4629_s21 + $0x1e8] sm:$0xff]   ;;  %v4031_v52 = vld [vmem:[%s4629_s21 + $0x1e0] sm:$0xff]  }
  0x63   : > { %3527 = vmatpush3.bf16.msra.mxu0 %v3996_v15  ;;  %2458 = vmatprep.mubr.bf16.mxu0 %v3226_v36  ;;  %v4025_v46 = vld [vmem:[%s4629_s21 + $0x1b0] sm:$0xff]   ;;  %v4028_v49 = vld [vmem:[%s4629_s21 + $0x128] sm:$0xff]   ;;  %v4032_v53 = vld [vmem:[%s4629_s21 + $0x120] sm:$0xff]  }
  0x64   : > { %3549 = vmatpush3.bf16.msra.mxu1 %v3997_v16  ;;  %3528 = vmatprep.subr.bf16.mxu0 %v3998_v17  ;;  %v4029_v50 = vld [vmem:[%s4629_s21 + $0x1a8] sm:$0xff]   ;;  %v4033_v54 = vld [vmem:[%s4629_s21 + $0x1a0] sm:$0xff]   ;;  %v4034_v55 = vld [vmem:[%s4629_s21 + $0x158] sm:$0xff]  }
  0x65   : > { %3550 = vmatprep.subr.bf16.mxu1 %v3999_v18  ;;  %2498 = vmatprep.mubr.bf16.mxu1 %v3228_v38  ;;  %v4035_v56 = vld [vmem:[%s4629_s21 + $0x1d8] sm:$0xff]   ;;  %v4038_v59 = vld [vmem:[%s4629_s21 + $0x150] sm:$0xff]   ;;  %v4042_v63 = vld [vmem:[%s4629_s21 + $0x148] sm:$0xff]  }
  0x66   : > { %v4036_v57 = vld [vmem:[%s4629_s21 + $0x118] sm:$0xff]   ;;  %v4039_v60 = vld [vmem:[%s4629_s21 + $0x1d0] sm:$0xff]   ;;  %v4043_v0 = vld [vmem:[%s4629_s21 + $0x1c8] sm:$0xff]  }
  0x67   : > { %3529 = vmatpush3.bf16.msra.mxu0 %v4000_v19  ;;  %v4037_v58 = vld [vmem:[%s4629_s21 + $0x198] sm:$0xff]   ;;  %v4040_v61 = vld [vmem:[%s4629_s21 + $0x110] sm:$0xff]   ;;  %v4044_v1 = vld [vmem:[%s4629_s21 + $0x108] sm:$0xff]  }
  0x68   : > { %3551 = vmatpush3.bf16.msra.mxu1 %v4001_v20  ;;  %3530 = vmatprep.subr.bf16.mxu0 %v4002_v21  ;;  %v4041_v62 = vld [vmem:[%s4629_s21 + $0x190] sm:$0xff]   ;;  %v4045_v2 = vld [vmem:[%s4629_s21 + $0x188] sm:$0xff]   ;;  %v4046_v3 = vld [vmem:[%s4629_s21 + $0x140] sm:$0xff]  }
  0x69   : > { %3552 = vmatprep.subr.bf16.mxu1 %v4003_v22  ;;  %v4047_v4 = vld [vmem:[%s4629_s21 + $0x1c0] sm:$0xff]   ;;  %v251_v7 = vld [vmem:[%s4623_s24 + $0x10] sm:$0xff]  ;;  %v252_v10 = vld [vmem:[%s4623_s24 + $0x18] sm:$0xff] }
  0x6a   : > { %v4048_v5 = vld [vmem:[%s4629_s21 + $0x100] sm:$0xff]   ;;  %v3229_v8 = vcombine.low %v251_v7, %v251_v7  ;;  %v3230_v9 = vcombine.high %v251_v7, %v251_v7  ;;  %v3231_v11 = vcombine.low %v252_v10, %v252_v10  ;;  %v3232_v12 = vcombine.high %v252_v10, %v252_v10  ;;  %v4054_v13 = vld [vmem:[%s4629_s21 + $0x278] sm:$0xff]   ;;  %v4058_v17 = vld [vmem:[%s4629_s21 + $0x270] sm:$0xff]  }
  0x6b   : > { %3531 = vmatpush3.bf16.msra.mxu0 %v4004_v23  ;;  %v4049_v6 = vld [vmem:[%s4629_s21 + $0x180] sm:$0xff]   ;;  %v4055_v14 = vld [vmem:[%s4629_s21 + $0x2f8] sm:$0xff]   ;;  %v4059_v18 = vld [vmem:[%s4629_s21 + $0x2f0] sm:$0xff]  }
  0x6c   : > { %3553 = vmatpush3.bf16.msra.mxu1 %v4005_v24  ;;  %3532 = vmatprep.subr.bf16.mxu0 %v4006_v25  ;;  %v4056_v15 = vld [vmem:[%s4629_s21 + $0x238] sm:$0xff]   ;;  %v4060_v19 = vld [vmem:[%s4629_s21 + $0x230] sm:$0xff]   ;;  %v4062_v21 = vld [vmem:[%s4629_s21 + $0x268] sm:$0xff]  }
  0x6d   : > { %3554 = vmatprep.subr.bf16.mxu1 %v4007_v26  ;;  %v4057_v16 = vld [vmem:[%s4629_s21 + $0x2b8] sm:$0xff]   ;;  %v4061_v20 = vld [vmem:[%s4629_s21 + $0x2b0] sm:$0xff]   ;;  %v4063_v22 = vld [vmem:[%s4629_s21 + $0x2e8] sm:$0xff]  }
  0x6e   : > { %v4064_v23 = vld [vmem:[%s4629_s21 + $0x228] sm:$0xff]   ;;  %v4066_v25 = vld [vmem:[%s4629_s21 + $0x260] sm:$0xff]   ;;  %v4074_v33 = vld [vmem:[%s4629_s21 + $0x250] sm:$0xff]  }
  0x6f   : > { %3533 = vmatpush3.bf16.msra.mxu0 %v4008_v27  ;;  %v4065_v24 = vld [vmem:[%s4629_s21 + $0x2a8] sm:$0xff]   ;;  %v4067_v26 = vld [vmem:[%s4629_s21 + $0x2e0] sm:$0xff]   ;;  %v4075_v34 = vld [vmem:[%s4629_s21 + $0x2d0] sm:$0xff]  }
  0x70   : > { %3555 = vmatpush3.bf16.msra.mxu1 %v4009_v28  ;;  %3534 = vmatprep.subr.bf16.mxu0 %v4010_v29  ;;  %v4068_v27 = vld [vmem:[%s4629_s21 + $0x220] sm:$0xff]   ;;  %v4070_v29 = vld [vmem:[%s4629_s21 + $0x258] sm:$0xff]   ;;  %v4077_v36 = vld [vmem:[%s4629_s21 + $0x290] sm:$0xff]  }
  0x71   : > { %3556 = vmatprep.subr.bf16.mxu1 %v4011_v30  ;;  %v4069_v28 = vld [vmem:[%s4629_s21 + $0x2a0] sm:$0xff]   ;;  %v4071_v30 = vld [vmem:[%s4629_s21 + $0x2d8] sm:$0xff]   ;;  %v4079_v38 = vld [vmem:[%s4629_s21 + $0x2c8] sm:$0xff]  }
  0x72   : > { %v4110_v7 = vld [vmem:[%s4629_s21 + $0x350] sm:$0xff]  }
  0x73   : > { %3535 = vmatpush3.bf16.msra.mxu0 %v4012_v31  ;;  %v4072_v31 = vld [vmem:[%s4629_s21 + $0x218] sm:$0xff]   ;;  %v4113_v10 = vld [vmem:[%s4629_s21 + $0x390] sm:$0xff]  }
  0x74   : > { %3557 = vmatpush3.bf16.msra.mxu1 %v4013_v32  ;;  %3564 = vmatprep.subr.bf16.mxu0 %v4018_v39  ;;  %v4073_v32 = vld [vmem:[%s4629_s21 + $0x298] sm:$0xff]   ;;  %v4080_v39 = vld [vmem:[%s4629_s21 + $0x208] sm:$0xff]  }
  0x75   : > { %3586 = vmatprep.subr.bf16.mxu1 %v4019_v40  ;;  %v4081_v40 = vld [vmem:[%s4629_s21 + $0x288] sm:$0xff]  }
  0x76   : > { %2459 = vmatmul.mubr.bf16.vlgmr.msra.gmra.mxu0 %v3225_v35  ;;  %v4076_v35 = vld [vmem:[%s4629_s21 + $0x210] sm:$0xff]  }
  0x77   : > { %2499 = vmatmul.mubr.bf16.vlgmr.msra.gmra.mxu1 %v3227_v37  ;;  %3565 = vmatpush3.bf16.msra.mxu0 %v4020_v41  ;;  %v4078_v37 = vld [vmem:[%s4629_s21 + $0x248] sm:$0xff]   ;;  %v4082_v41 = vld [vmem:[%s4629_s21 + $0x240] sm:$0xff]  }
  0x78   : > { %3587 = vmatpush3.bf16.msra.mxu1 %v4021_v42  ;;  %3566 = vmatprep.subr.bf16.mxu0 %v4022_v43  ;;  %v4083_v42 = vld [vmem:[%s4629_s21 + $0x2c0] sm:$0xff]  }
  0x79   : > { %3588 = vmatprep.subr.bf16.mxu1 %v4023_v44  ;;  %2538 = vmatprep.mubr.bf16.mxu0 %v3230_v9  ;;  %v4084_v43 = vld [vmem:[%s4629_s21 + $0x200] sm:$0xff]   ;;  %v4112_v9 = vld [vmem:[%s4629_s21 + $0x310] sm:$0xff]  }
  0x7a   : > { %2578 = vmatprep.mubr.bf16.mxu1 %v3232_v12  ;;  %v4085_v44 = vld [vmem:[%s4629_s21 + $0x280] sm:$0xff]   ;;  %v4115_v12 = vld [vmem:[%s4629_s21 + $0x3c8] sm:$0xff]  }
  0x7b   : > { %3567 = vmatpush3.bf16.msra.mxu0 %v4024_v45  ;;  %v253_v45 = vld [vmem:[%s4623_s24 + $0x20] sm:$0xff] }
  0x7c   : > { %3589 = vmatpush3.bf16.msra.mxu1 %v4025_v46  ;;  %3568 = vmatprep.subr.bf16.mxu0 %v4026_v47  ;;  %v254_v46 = vld [vmem:[%s4623_s24 + $0x28] sm:$0xff]  ;;  %v3233_v47 = vcombine.low %v253_v45, %v253_v45 }
  0x7d   : > { %3590 = vmatprep.subr.bf16.mxu1 %v4027_v48  ;;  %v3234_v48 = vcombine.high %v253_v45, %v253_v45  ;;  %v4146_v45 = vld [vmem:[%s4629_s21 + $0x450] sm:$0xff]  }
  0x7f   : > { %3569 = vmatpush3.bf16.msra.mxu0 %v4028_v49  ;;  %v3235_v49 = vcombine.low %v254_v46, %v254_v46 }
  0x80   : > { %3591 = vmatpush3.bf16.msra.mxu1 %v4029_v50  ;;  %3570 = vmatprep.subr.bf16.mxu0 %v4030_v51  ;;  %v3236_v50 = vcombine.high %v254_v46, %v254_v46  ;;  %v4090_v51 = vld [vmem:[%s4629_s21 + $0x378] sm:$0xff]   ;;  %v4147_v46 = vld [vmem:[%s4629_s21 + $0x4d0] sm:$0xff]  }
  0x81   : > { %3592 = vmatprep.subr.bf16.mxu1 %v4031_v52  ;;  %v4091_v52 = vld [vmem:[%s4629_s21 + $0x3f8] sm:$0xff]  }
  0x83   : > { %3571 = vmatpush3.bf16.msra.mxu0 %v4032_v53  ;;  %v4092_v53 = vld [vmem:[%s4629_s21 + $0x338] sm:$0xff]  }
  0x84   : > { %3593 = vmatpush3.bf16.msra.mxu1 %v4033_v54  ;;  %3572 = vmatprep.subr.bf16.mxu0 %v4034_v55  ;;  %v4093_v54 = vld [vmem:[%s4629_s21 + $0x3b8] sm:$0xff]   ;;  %v4094_v55 = vld [vmem:[%s4629_s21 + $0x370] sm:$0xff]  }
  0x85   : > { %3594 = vmatprep.subr.bf16.mxu1 %v4035_v56  ;;  %v4095_v56 = vld [vmem:[%s4629_s21 + $0x3f0] sm:$0xff]  }
  0x87   : > { %3573 = vmatpush3.bf16.msra.mxu0 %v4036_v57  ;;  %v4096_v57 = vld [vmem:[%s4629_s21 + $0x330] sm:$0xff]  }
  0x88   : > { %3595 = vmatpush3.bf16.msra.mxu1 %v4037_v58  ;;  %3574 = vmatprep.subr.bf16.mxu0 %v4038_v59  ;;  %v4097_v58 = vld [vmem:[%s4629_s21 + $0x3b0] sm:$0xff]   ;;  %v4098_v59 = vld [vmem:[%s4629_s21 + $0x368] sm:$0xff]  }
  0x89   : > { %3596 = vmatprep.subr.bf16.mxu1 %v4039_v60  ;;  %v4099_v60 = vld [vmem:[%s4629_s21 + $0x3e8] sm:$0xff]  }
  0x8b   : > { %3575 = vmatpush3.bf16.msra.mxu0 %v4040_v61  ;;  %v4100_v61 = vld [vmem:[%s4629_s21 + $0x328] sm:$0xff]  }
  0x8c   : > { %3597 = vmatpush3.bf16.msra.mxu1 %v4041_v62  ;;  %3576 = vmatprep.subr.bf16.mxu0 %v4042_v63  ;;  %v4101_v62 = vld [vmem:[%s4629_s21 + $0x3a8] sm:$0xff]   ;;  %v4102_v63 = vld [vmem:[%s4629_s21 + $0x360] sm:$0xff]  }
  0x8d   : > { %3598 = vmatprep.subr.bf16.mxu1 %v4043_v0  ;;  %v4103_v0 = vld [vmem:[%s4629_s21 + $0x3e0] sm:$0xff]  }
  0x8f   : > { %3577 = vmatpush3.bf16.msra.mxu0 %v4044_v1  ;;  %v4104_v1 = vld [vmem:[%s4629_s21 + $0x320] sm:$0xff]  }
  0x90   : > { %3599 = vmatpush3.bf16.msra.mxu1 %v4045_v2  ;;  %3578 = vmatprep.subr.bf16.mxu0 %v4046_v3  ;;  %v4105_v2 = vld [vmem:[%s4629_s21 + $0x3a0] sm:$0xff]   ;;  %v4106_v3 = vld [vmem:[%s4629_s21 + $0x358] sm:$0xff]  }
  0x91   : > { %3600 = vmatprep.subr.bf16.mxu1 %v4047_v4  ;;  %v4107_v4 = vld [vmem:[%s4629_s21 + $0x3d8] sm:$0xff]  }
  0x93   : > { %3579 = vmatpush3.bf16.msra.mxu0 %v4048_v5  ;;  %v4108_v5 = vld [vmem:[%s4629_s21 + $0x318] sm:$0xff]  }
  0x94   : > { %3601 = vmatpush3.bf16.msra.mxu1 %v4049_v6  ;;  %3608 = vmatprep.subr.bf16.mxu0 %v4054_v13  ;;  %v4109_v6 = vld [vmem:[%s4629_s21 + $0x398] sm:$0xff]   ;;  %v4116_v13 = vld [vmem:[%s4629_s21 + $0x308] sm:$0xff]  }
  0x95   : > { %3630 = vmatprep.subr.bf16.mxu1 %v4055_v14  ;;  %v4117_v14 = vld [vmem:[%s4629_s21 + $0x388] sm:$0xff]  }
  0x96   : > { %2539 = vmatmul.mubr.bf16.vlgmr.msra.gmra.mxu0 %v3229_v8  ;;  %v4111_v8 = vld [vmem:[%s4629_s21 + $0x3d0] sm:$0xff]  }
  0x97   : > { %2579 = vmatmul.mubr.bf16.vlgmr.msra.gmra.mxu1 %v3231_v11  ;;  %3609 = vmatpush3.bf16.msra.mxu0 %v4056_v15  ;;  %v4114_v11 = vld [vmem:[%s4629_s21 + $0x348] sm:$0xff]   ;;  %v4118_v15 = vld [vmem:[%s4629_s21 + $0x340] sm:$0xff]  }
  0x98   : > { %3631 = vmatpush3.bf16.msra.mxu1 %v4057_v16  ;;  %3610 = vmatprep.subr.bf16.mxu0 %v4058_v17  ;;  %v4119_v16 = vld [vmem:[%s4629_s21 + $0x3c0] sm:$0xff]  }
  0x99   : > { %3632 = vmatprep.subr.bf16.mxu1 %v4059_v18  ;;  %2618 = vmatprep.mubr.bf16.mxu0 %v3234_v48  ;;  %v4120_v17 = vld [vmem:[%s4629_s21 + $0x300] sm:$0xff]   ;;  %v4149_v48 = vld [vmem:[%s4629_s21 + $0x490] sm:$0xff]  }
  0x9a   : > { %2658 = vmatprep.mubr.bf16.mxu1 %v3236_v50  ;;  %v4121_v18 = vld [vmem:[%s4629_s21 + $0x380] sm:$0xff]   ;;  %v4151_v50 = vld [vmem:[%s4629_s21 + $0x4c8] sm:$0xff]  }
  0x9b   : > { %3611 = vmatpush3.bf16.msra.mxu0 %v4060_v19  ;;  %v255_v19 = vld [vmem:[%s4623_s24 + $0x30] sm:$0xff] }
  0x9c   : > { %3633 = vmatpush3.bf16.msra.mxu1 %v4061_v20  ;;  %3612 = vmatprep.subr.bf16.mxu0 %v4062_v21  ;;  %v256_v20 = vld [vmem:[%s4623_s24 + $0x38] sm:$0xff]  ;;  %v3237_v21 = vcombine.low %v255_v19, %v255_v19 }
  0x9d   : > { %3634 = vmatprep.subr.bf16.mxu1 %v4063_v22  ;;  %v3238_v22 = vcombine.high %v255_v19, %v255_v19  ;;  %v4182_v19 = vld [vmem:[%s4629_s21 + $0x550] sm:$0xff]  }
  0x9f   : > { %3613 = vmatpush3.bf16.msra.mxu0 %v4064_v23  ;;  %v3239_v23 = vcombine.low %v256_v20, %v256_v20 }
  0xa0   : > { %3635 = vmatpush3.bf16.msra.mxu1 %v4065_v24  ;;  %3614 = vmatprep.subr.bf16.mxu0 %v4066_v25  ;;  %v4126_v24 = vld [vmem:[%s4629_s21 + $0x478] sm:$0xff]   ;;  %v3240_v25 = vcombine.high %v256_v20, %v256_v20  ;;  %v4183_v20 = vld [vmem:[%s4629_s21 + $0x5d0] sm:$0xff]  }
  0xa1   : > { %3636 = vmatprep.subr.bf16.mxu1 %v4067_v26  ;;  %v4127_v26 = vld [vmem:[%s4629_s21 + $0x4f8] sm:$0xff]  }
  0xa3   : > { %3615 = vmatpush3.bf16.msra.mxu0 %v4068_v27  ;;  %v4128_v27 = vld [vmem:[%s4629_s21 + $0x438] sm:$0xff]  }
  0xa4   : > { %3637 = vmatpush3.bf16.msra.mxu1 %v4069_v28  ;;  %3616 = vmatprep.subr.bf16.mxu0 %v4070_v29  ;;  %v4129_v28 = vld [vmem:[%s4629_s21 + $0x4b8] sm:$0xff]   ;;  %v4130_v29 = vld [vmem:[%s4629_s21 + $0x470] sm:$0xff]  }
  0xa5   : > { %3638 = vmatprep.subr.bf16.mxu1 %v4071_v30  ;;  %v4131_v30 = vld [vmem:[%s4629_s21 + $0x4f0] sm:$0xff]  }
  0xa7   : > { %3617 = vmatpush3.bf16.msra.mxu0 %v4072_v31  ;;  %v4132_v31 = vld [vmem:[%s4629_s21 + $0x430] sm:$0xff]  }
  0xa8   : > { %3639 = vmatpush3.bf16.msra.mxu1 %v4073_v32  ;;  %3618 = vmatprep.subr.bf16.mxu0 %v4074_v33  ;;  %v4133_v32 = vld [vmem:[%s4629_s21 + $0x4b0] sm:$0xff]   ;;  %v4134_v33 = vld [vmem:[%s4629_s21 + $0x468] sm:$0xff]  }
  0xa9   : > { %3640 = vmatprep.subr.bf16.mxu1 %v4075_v34  ;;  %v4135_v34 = vld [vmem:[%s4629_s21 + $0x4e8] sm:$0xff]  }
  0xab   : > { %3619 = vmatpush3.bf16.msra.mxu0 %v4076_v35  ;;  %v4136_v35 = vld [vmem:[%s4629_s21 + $0x428] sm:$0xff]  }
  0xac   : > { %3641 = vmatpush3.bf16.msra.mxu1 %v4077_v36  ;;  %3620 = vmatprep.subr.bf16.mxu0 %v4078_v37  ;;  %v4137_v36 = vld [vmem:[%s4629_s21 + $0x4a8] sm:$0xff]   ;;  %v4138_v37 = vld [vmem:[%s4629_s21 + $0x460] sm:$0xff]  }
  0xad   : > { %3642 = vmatprep.subr.bf16.mxu1 %v4079_v38  ;;  %v4139_v38 = vld [vmem:[%s4629_s21 + $0x4e0] sm:$0xff]  }
  0xaf   : > { %3621 = vmatpush3.bf16.msra.mxu0 %v4080_v39  ;;  %v4140_v39 = vld [vmem:[%s4629_s21 + $0x420] sm:$0xff]  }
  0xb0   : > { %3643 = vmatpush3.bf16.msra.mxu1 %v4081_v40  ;;  %3622 = vmatprep.subr.bf16.mxu0 %v4082_v41  ;;  %v4141_v40 = vld [vmem:[%s4629_s21 + $0x4a0] sm:$0xff]   ;;  %v4142_v41 = vld [vmem:[%s4629_s21 + $0x458] sm:$0xff]  }
  0xb1   : > { %3644 = vmatprep.subr.bf16.mxu1 %v4083_v42  ;;  %v4143_v42 = vld [vmem:[%s4629_s21 + $0x4d8] sm:$0xff]  }
  0xb3   : > { %3623 = vmatpush3.bf16.msra.mxu0 %v4084_v43  ;;  %v4144_v43 = vld [vmem:[%s4629_s21 + $0x418] sm:$0xff]  }
  0xb4   : > { %3645 = vmatpush3.bf16.msra.mxu1 %v4085_v44  ;;  %3652 = vmatprep.subr.bf16.mxu0 %v4090_v51  ;;  %v4145_v44 = vld [vmem:[%s4629_s21 + $0x498] sm:$0xff]   ;;  %v4152_v51 = vld [vmem:[%s4629_s21 + $0x408] sm:$0xff]  }
  0xb5   : > { %3674 = vmatprep.subr.bf16.mxu1 %v4091_v52  ;;  %v4153_v52 = vld [vmem:[%s4629_s21 + $0x488] sm:$0xff]  }
  0xb6   : > { %2619 = vmatmul.mubr.bf16.vlgmr.msra.gmra.mxu0 %v3233_v47  ;;  %v4148_v47 = vld [vmem:[%s4629_s21 + $0x410] sm:$0xff]  }
  0xb7   : > { %2659 = vmatmul.mubr.bf16.vlgmr.msra.gmra.mxu1 %v3235_v49  ;;  %3653 = vmatpush3.bf16.msra.mxu0 %v4092_v53  ;;  %v4150_v49 = vld [vmem:[%s4629_s21 + $0x448] sm:$0xff]   ;;  %v4154_v53 = vld [vmem:[%s4629_s21 + $0x440] sm:$0xff]  }
  0xb8   : > { %3675 = vmatpush3.bf16.msra.mxu1 %v4093_v54  ;;  %3654 = vmatprep.subr.bf16.mxu0 %v4094_v55  ;;  %v4155_v54 = vld [vmem:[%s4629_s21 + $0x4c0] sm:$0xff]  }
  0xb9   : > { %3676 = vmatprep.subr.bf16.mxu1 %v4095_v56  ;;  %2698 = vmatprep.mubr.bf16.mxu0 %v3238_v22  ;;  %v4156_v55 = vld [vmem:[%s4629_s21 + $0x400] sm:$0xff]   ;;  %v4185_v22 = vld [vmem:[%s4629_s21 + $0x590] sm:$0xff]  }
  0xba   : > { %2738 = vmatprep.mubr.bf16.mxu1 %v3240_v25  ;;  %v4157_v56 = vld [vmem:[%s4629_s21 + $0x480] sm:$0xff]   ;;  %v4188_v25 = vld [vmem:[%s4629_s21 + $0x508] sm:$0xff]  }
  0xbb   : > { %3655 = vmatpush3.bf16.msra.mxu0 %v4096_v57  ;;  %v257_v57 = vld [vmem:[%s4623_s24 + $0x40] sm:$0xff] }
  0xbc   : > { %3677 = vmatpush3.bf16.msra.mxu1 %v4097_v58  ;;  %3656 = vmatprep.subr.bf16.mxu0 %v4098_v59  ;;  %v3241_v58 = vcombine.low %v257_v57, %v257_v57  ;;  %v3242_v59 = vcombine.high %v257_v57, %v257_v57  ;;  %v4218_v57 = vld [vmem:[%s4629_s21 + $0x650] sm:$0xff]  }
  0xbd   : > { %3678 = vmatprep.subr.bf16.mxu1 %v4099_v60  ;;  %v258_v60 = vld [vmem:[%s4623_s24 + $0x48] sm:$0xff] }
  0xbf   : > { %3657 = vmatpush3.bf16.msra.mxu0 %v4100_v61  ;;  %v3243_v61 = vcombine.low %v258_v60, %v258_v60 }
  0xc0   : > { %3679 = vmatpush3.bf16.msra.mxu1 %v4101_v62  ;;  %3658 = vmatprep.subr.bf16.mxu0 %v4102_v63  ;;  %v3244_v62 = vcombine.high %v258_v60, %v258_v60  ;;  %v4162_v63 = vld [vmem:[%s4629_s21 + $0x578] sm:$0xff]   ;;  %v4221_v60 = vld [vmem:[%s4629_s21 + $0x690] sm:$0xff]  }
  0xc1   : > { %3680 = vmatprep.subr.bf16.mxu1 %v4103_v0  ;;  %v4163_v0 = vld [vmem:[%s4629_s21 + $0x5f8] sm:$0xff]  }
  0xc3   : > { %3659 = vmatpush3.bf16.msra.mxu0 %v4104_v1  ;;  %v4164_v1 = vld [vmem:[%s4629_s21 + $0x538] sm:$0xff]  }
  0xc4   : > { %3681 = vmatpush3.bf16.msra.mxu1 %v4105_v2  ;;  %3660 = vmatprep.subr.bf16.mxu0 %v4106_v3  ;;  %v4165_v2 = vld [vmem:[%s4629_s21 + $0x5b8] sm:$0xff]   ;;  %v4166_v3 = vld [vmem:[%s4629_s21 + $0x570] sm:$0xff]  }
  0xc5   : > { %3682 = vmatprep.subr.bf16.mxu1 %v4107_v4  ;;  %v4167_v4 = vld [vmem:[%s4629_s21 + $0x5f0] sm:$0xff]  }
  0xc7   : > { %3661 = vmatpush3.bf16.msra.mxu0 %v4108_v5  ;;  %v4168_v5 = vld [vmem:[%s4629_s21 + $0x530] sm:$0xff]  }
  0xc8   : > { %3683 = vmatpush3.bf16.msra.mxu1 %v4109_v6  ;;  %3662 = vmatprep.subr.bf16.mxu0 %v4110_v7  ;;  %v4169_v6 = vld [vmem:[%s4629_s21 + $0x5b0] sm:$0xff]   ;;  %v4170_v7 = vld [vmem:[%s4629_s21 + $0x568] sm:$0xff]  }
  0xc9   : > { %3684 = vmatprep.subr.bf16.mxu1 %v4111_v8  ;;  %v4171_v8 = vld [vmem:[%s4629_s21 + $0x5e8] sm:$0xff]  }
  0xcb   : > { %3663 = vmatpush3.bf16.msra.mxu0 %v4112_v9  ;;  %v4172_v9 = vld [vmem:[%s4629_s21 + $0x528] sm:$0xff]  }
  0xcc   : > { %3685 = vmatpush3.bf16.msra.mxu1 %v4113_v10  ;;  %3664 = vmatprep.subr.bf16.mxu0 %v4114_v11  ;;  %v4173_v10 = vld [vmem:[%s4629_s21 + $0x5a8] sm:$0xff]   ;;  %v4174_v11 = vld [vmem:[%s4629_s21 + $0x560] sm:$0xff]  }
  0xcd   : > { %3686 = vmatprep.subr.bf16.mxu1 %v4115_v12  ;;  %v4175_v12 = vld [vmem:[%s4629_s21 + $0x5e0] sm:$0xff]  }
  0xcf   : > { %3665 = vmatpush3.bf16.msra.mxu0 %v4116_v13  ;;  %v4176_v13 = vld [vmem:[%s4629_s21 + $0x520] sm:$0xff]  }
  0xd0   : > { %3687 = vmatpush3.bf16.msra.mxu1 %v4117_v14  ;;  %3666 = vmatprep.subr.bf16.mxu0 %v4118_v15  ;;  %v4177_v14 = vld [vmem:[%s4629_s21 + $0x5a0] sm:$0xff]   ;;  %v4178_v15 = vld [vmem:[%s4629_s21 + $0x558] sm:$0xff]  }
  0xd1   : > { %3688 = vmatprep.subr.bf16.mxu1 %v4119_v16  ;;  %v4179_v16 = vld [vmem:[%s4629_s21 + $0x5d8] sm:$0xff]  }
  0xd3   : > { %3667 = vmatpush3.bf16.msra.mxu0 %v4120_v17  ;;  %v4180_v17 = vld [vmem:[%s4629_s21 + $0x518] sm:$0xff]  }
  0xd4   : > { %3689 = vmatpush3.bf16.msra.mxu1 %v4121_v18  ;;  %3696 = vmatprep.subr.bf16.mxu0 %v4126_v24  ;;  %v4181_v18 = vld [vmem:[%s4629_s21 + $0x598] sm:$0xff]   ;;  %v4187_v24 = vld [vmem:[%s4629_s21 + $0x5c8] sm:$0xff]  }
  0xd5   : > { %3718 = vmatprep.subr.bf16.mxu1 %v4127_v26  ;;  %v4189_v26 = vld [vmem:[%s4629_s21 + $0x588] sm:$0xff]  }
  0xd6   : > { %2699 = vmatmul.mubr.bf16.vlgmr.msra.gmra.mxu0 %v3237_v21  ;;  %v4184_v21 = vld [vmem:[%s4629_s21 + $0x510] sm:$0xff]  }
  0xd7   : > { %2739 = vmatmul.mubr.bf16.vlgmr.msra.gmra.mxu1 %v3239_v23  ;;  %3697 = vmatpush3.bf16.msra.mxu0 %v4128_v27  ;;  %v4186_v23 = vld [vmem:[%s4629_s21 + $0x548] sm:$0xff]   ;;  %v4190_v27 = vld [vmem:[%s4629_s21 + $0x540] sm:$0xff]  }
  0xd8   : > { %3719 = vmatpush3.bf16.msra.mxu1 %v4129_v28  ;;  %3698 = vmatprep.subr.bf16.mxu0 %v4130_v29  ;;  %v4191_v28 = vld [vmem:[%s4629_s21 + $0x5c0] sm:$0xff]  }
  0xd9   : > { %3720 = vmatprep.subr.bf16.mxu1 %v4131_v30  ;;  %2778 = vmatprep.mubr.bf16.mxu0 %v3242_v59  ;;  %v4192_v29 = vld [vmem:[%s4629_s21 + $0x500] sm:$0xff]   ;;  %v4220_v59 = vld [vmem:[%s4629_s21 + $0x610] sm:$0xff]  }
  0xda   : > { %2818 = vmatprep.mubr.bf16.mxu1 %v3244_v62  ;;  %v4193_v30 = vld [vmem:[%s4629_s21 + $0x580] sm:$0xff]   ;;  %v4223_v62 = vld [vmem:[%s4629_s21 + $0x6c8] sm:$0xff]  }
  0xdb   : > { %3699 = vmatpush3.bf16.msra.mxu0 %v4132_v31  ;;  %v259_v31 = vld [vmem:[%s4623_s24 + $0x50] sm:$0xff] }
  0xdc   : > { %3721 = vmatpush3.bf16.msra.mxu1 %v4133_v32  ;;  %3700 = vmatprep.subr.bf16.mxu0 %v4134_v33  ;;  %v260_v32 = vld [vmem:[%s4623_s24 + $0x58] sm:$0xff]  ;;  %v3245_v33 = vcombine.low %v259_v31, %v259_v31 }
  0xdd   : > { %3722 = vmatprep.subr.bf16.mxu1 %v4135_v34  ;;  %v3246_v34 = vcombine.high %v259_v31, %v259_v31  ;;  %v4243_v31 = vld [vmem:[%s4629_s21 + $0x7e8] sm:$0xff]  }
  0xdf   : > { %3701 = vmatpush3.bf16.msra.mxu0 %v4136_v35  ;;  %v3247_v35 = vcombine.low %v260_v32, %v260_v32 }
  0xe0   : > { %3723 = vmatpush3.bf16.msra.mxu1 %v4137_v36  ;;  %3702 = vmatprep.subr.bf16.mxu0 %v4138_v37  ;;  %v3248_v36 = vcombine.high %v260_v32, %v260_v32  ;;  %v4198_v37 = vld [vmem:[%s4629_s21 + $0x678] sm:$0xff]   ;;  %v4244_v32 = vld [vmem:[%s4629_s21 + $0x728] sm:$0xff]  }
  0xe1   : > { %3724 = vmatprep.subr.bf16.mxu1 %v4139_v38  ;;  %v4199_v38 = vld [vmem:[%s4629_s21 + $0x6f8] sm:$0xff]  }
  0xe3   : > { %3703 = vmatpush3.bf16.msra.mxu0 %v4140_v39  ;;  %v4200_v39 = vld [vmem:[%s4629_s21 + $0x638] sm:$0xff]  }
  0xe4   : > { %3725 = vmatpush3.bf16.msra.mxu1 %v4141_v40  ;;  %3704 = vmatprep.subr.bf16.mxu0 %v4142_v41  ;;  %v4201_v40 = vld [vmem:[%s4629_s21 + $0x6b8] sm:$0xff]   ;;  %v4202_v41 = vld [vmem:[%s4629_s21 + $0x670] sm:$0xff]  }
  0xe5   : > { %3726 = vmatprep.subr.bf16.mxu1 %v4143_v42  ;;  %v4203_v42 = vld [vmem:[%s4629_s21 + $0x6f0] sm:$0xff]  }
  0xe7   : > { %3705 = vmatpush3.bf16.msra.mxu0 %v4144_v43  ;;  %v4204_v43 = vld [vmem:[%s4629_s21 + $0x630] sm:$0xff]  }
  0xe8   : > { %3727 = vmatpush3.bf16.msra.mxu1 %v4145_v44  ;;  %3706 = vmatprep.subr.bf16.mxu0 %v4146_v45  ;;  %v4205_v44 = vld [vmem:[%s4629_s21 + $0x6b0] sm:$0xff]   ;;  %v4206_v45 = vld [vmem:[%s4629_s21 + $0x668] sm:$0xff]  }
  0xe9   : > { %3728 = vmatprep.subr.bf16.mxu1 %v4147_v46  ;;  %v4207_v46 = vld [vmem:[%s4629_s21 + $0x6e8] sm:$0xff]  }
  0xeb   : > { %3707 = vmatpush3.bf16.msra.mxu0 %v4148_v47  ;;  %v4208_v47 = vld [vmem:[%s4629_s21 + $0x628] sm:$0xff]  }
  0xec   : > { %3729 = vmatpush3.bf16.msra.mxu1 %v4149_v48  ;;  %3708 = vmatprep.subr.bf16.mxu0 %v4150_v49  ;;  %v4209_v48 = vld [vmem:[%s4629_s21 + $0x6a8] sm:$0xff]   ;;  %v4210_v49 = vld [vmem:[%s4629_s21 + $0x660] sm:$0xff]  }
  0xed   : > { %3730 = vmatprep.subr.bf16.mxu1 %v4151_v50  ;;  %v4211_v50 = vld [vmem:[%s4629_s21 + $0x6e0] sm:$0xff]  }
  0xef   : > { %3709 = vmatpush3.bf16.msra.mxu0 %v4152_v51  ;;  %v4212_v51 = vld [vmem:[%s4629_s21 + $0x620] sm:$0xff]  }
  0xf0   : > { %3731 = vmatpush3.bf16.msra.mxu1 %v4153_v52  ;;  %3710 = vmatprep.subr.bf16.mxu0 %v4154_v53  ;;  %v4213_v52 = vld [vmem:[%s4629_s21 + $0x6a0] sm:$0xff]   ;;  %v4214_v53 = vld [vmem:[%s4629_s21 + $0x658] sm:$0xff]  }
  0xf1   : > { %3732 = vmatprep.subr.bf16.mxu1 %v4155_v54  ;;  %v4215_v54 = vld [vmem:[%s4629_s21 + $0x6d8] sm:$0xff]  }
  0xf3   : > { %3711 = vmatpush3.bf16.msra.mxu0 %v4156_v55  ;;  %v4216_v55 = vld [vmem:[%s4629_s21 + $0x618] sm:$0xff]  }
  0xf4   : > { %3733 = vmatpush3.bf16.msra.mxu1 %v4157_v56  ;;  %3740 = vmatprep.subr.bf16.mxu0 %v4162_v63  ;;  %v4217_v56 = vld [vmem:[%s4629_s21 + $0x698] sm:$0xff]   ;;  %v4224_v63 = vld [vmem:[%s4629_s21 + $0x608] sm:$0xff]  }
  0xf5   : > { %3762 = vmatprep.subr.bf16.mxu1 %v4163_v0  ;;  %v4225_v0 = vld [vmem:[%s4629_s21 + $0x688] sm:$0xff]  }
  0xf6   : > { %2779 = vmatmul.mubr.bf16.vlgmr.msra.gmra.mxu0 %v3241_v58  ;;  %v4219_v58 = vld [vmem:[%s4629_s21 + $0x6d0] sm:$0xff]  }
  0xf7   : > { %2819 = vmatmul.mubr.bf16.vlgmr.msra.gmra.mxu1 %v3243_v61  ;;  %3741 = vmatpush3.bf16.msra.mxu0 %v4164_v1  ;;  %v4222_v61 = vld [vmem:[%s4629_s21 + $0x648] sm:$0xff]   ;;  %v4226_v1 = vld [vmem:[%s4629_s21 + $0x640] sm:$0xff]  }
  0xf8   : > { %3763 = vmatpush3.bf16.msra.mxu1 %v4165_v2  ;;  %3742 = vmatprep.subr.bf16.mxu0 %v4166_v3  ;;  %v4227_v2 = vld [vmem:[%s4629_s21 + $0x6c0] sm:$0xff]  }
  0xf9   : > { %3764 = vmatprep.subr.bf16.mxu1 %v4167_v4  ;;  %2858 = vmatprep.mubr.bf16.mxu0 %v3246_v34  ;;  %v4228_v3 = vld [vmem:[%s4629_s21 + $0x600] sm:$0xff]  }
  0xfa   : > { %2898 = vmatprep.mubr.bf16.mxu1 %v3248_v36  ;;  %v4229_v4 = vld [vmem:[%s4629_s21 + $0x680] sm:$0xff]  }
  0xfb   : > { %3743 = vmatpush3.bf16.msra.mxu0 %v4168_v5  ;;  %v261_v5 = vld [vmem:[%s4623_s24 + $0x60] sm:$0xff] }
  0xfc   : > { %3765 = vmatpush3.bf16.msra.mxu1 %v4169_v6  ;;  %3744 = vmatprep.subr.bf16.mxu0 %v4170_v7  ;;  %v262_v6 = vld [vmem:[%s4623_s24 + $0x68] sm:$0xff]  ;;  %v4246_v34 = vld [vmem:[%s4629_s21 + $0x760] sm:$0xff]  }
  0xfd   : > { %3766 = vmatprep.subr.bf16.mxu1 %v4171_v8  ;;  %v4248_v36 = vld [vmem:[%s4629_s21 + $0x720] sm:$0xff]  }
  0xff   : > { %3745 = vmatpush3.bf16.msra.mxu0 %v4172_v9  ;;  %v3249_v9 = vcombine.low %v261_v5, %v261_v5 }
 0x100   : > { %3767 = vmatpush3.bf16.msra.mxu1 %v4173_v10  ;;  %3746 = vmatprep.subr.bf16.mxu0 %v4174_v11  ;;  %v3250_v10 = vcombine.high %v261_v5, %v261_v5  ;;  %v3251_v11 = vcombine.low %v262_v6, %v262_v6 }
 0x101   : > { %3768 = vmatprep.subr.bf16.mxu1 %v4175_v12  ;;  %v4234_v12 = vld [vmem:[%s4629_s21 + $0x778] sm:$0xff]  }
 0x103   : > { %3747 = vmatpush3.bf16.msra.mxu0 %v4176_v13  ;;  %v3252_v13 = vcombine.high %v262_v6, %v262_v6 }
 0x104   : > { %3769 = vmatpush3.bf16.msra.mxu1 %v4177_v14  ;;  %3748 = vmatprep.subr.bf16.mxu0 %v4178_v15  ;;  %v4235_v14 = vld [vmem:[%s4629_s21 + $0x7f8] sm:$0xff]  }
 0x105   : > { %3770 = vmatprep.subr.bf16.mxu1 %v4179_v16 }
 0x107   : > { %3749 = vmatpush3.bf16.msra.mxu0 %v4180_v17  ;;  %v4236_v17 = vld [vmem:[%s4629_s21 + $0x738] sm:$0xff]  }
 0x108   : > { %3771 = vmatpush3.bf16.msra.mxu1 %v4181_v18  ;;  %3750 = vmatprep.subr.bf16.mxu0 %v4182_v19 }
 0x109   : > { %3772 = vmatprep.subr.bf16.mxu1 %v4183_v20  ;;  %v4237_v20 = vld [vmem:[%s4629_s21 + $0x7b8] sm:$0xff]  }
 0x10b   : > { %3751 = vmatpush3.bf16.msra.mxu0 %v4184_v21 }
 0x10c   : > { %3773 = vmatpush3.bf16.msra.mxu1 %v4185_v22  ;;  %3752 = vmatprep.subr.bf16.mxu0 %v4186_v23 }
 0x10d   : > { %3774 = vmatprep.subr.bf16.mxu1 %v4187_v24  ;;  %v4238_v24 = vld [vmem:[%s4629_s21 + $0x770] sm:$0xff]  }
 0x10f   : > { %3753 = vmatpush3.bf16.msra.mxu0 %v4188_v25  ;;  %v4239_v25 = vld [vmem:[%s4629_s21 + $0x7f0] sm:$0xff]  }
 0x110   : > { %3775 = vmatpush3.bf16.msra.mxu1 %v4189_v26  ;;  %3754 = vmatprep.subr.bf16.mxu0 %v4190_v27 }
 0x111   : > { %3776 = vmatprep.subr.bf16.mxu1 %v4191_v28  ;;  %v4240_v28 = vld [vmem:[%s4629_s21 + $0x730] sm:$0xff]  }
 0x113   : > { %3755 = vmatpush3.bf16.msra.mxu0 %v4192_v29  ;;  %v4241_v29 = vld [vmem:[%s4629_s21 + $0x7b0] sm:$0xff]  }
 0x114   : > { %3777 = vmatpush3.bf16.msra.mxu1 %v4193_v30  ;;  %3784 = vmatprep.subr.bf16.mxu0 %v4198_v37  ;;  %v4242_v30 = vld [vmem:[%s4629_s21 + $0x768] sm:$0xff]   ;;  %v4249_v37 = vld [vmem:[%s4629_s21 + $0x7a0] sm:$0xff]  }
 0x115   : > { %3806 = vmatprep.subr.bf16.mxu1 %v4199_v38  ;;  %v4250_v38 = vld [vmem:[%s4629_s21 + $0x758] sm:$0xff]  }
 0x116   : > { %2859 = vmatmul.mubr.bf16.vlgmr.msra.gmra.mxu0 %v3245_v33  ;;  %v4245_v33 = vld [vmem:[%s4629_s21 + $0x7a8] sm:$0xff]  }
 0x117   : > { %2899 = vmatmul.mubr.bf16.vlgmr.msra.gmra.mxu1 %v3247_v35  ;;  %3785 = vmatpush3.bf16.msra.mxu0 %v4200_v39  ;;  %v4247_v35 = vld [vmem:[%s4629_s21 + $0x7e0] sm:$0xff]   ;;  %v4251_v39 = vld [vmem:[%s4629_s21 + $0x7d8] sm:$0xff]  }
 0x118   : > { %3807 = vmatpush3.bf16.msra.mxu1 %v4201_v40  ;;  %3786 = vmatprep.subr.bf16.mxu0 %v4202_v41  ;;  %v4252_v40 = vld [vmem:[%s4629_s21 + $0x718] sm:$0xff]  }
 0x119   : > { %3808 = vmatprep.subr.bf16.mxu1 %v4203_v42  ;;  %2938 = vmatprep.mubr.bf16.mxu0 %v3250_v10  ;;  %v4253_v41 = vld [vmem:[%s4629_s21 + $0x798] sm:$0xff]   ;;  %v4254_v42 = vld [vmem:[%s4629_s21 + $0x750] sm:$0xff]  }
 0x11a   : > { %2978 = vmatprep.mubr.bf16.mxu1 %v3252_v13 }
 0x11b   : > { %3787 = vmatpush3.bf16.msra.mxu0 %v4204_v43  ;;  %v4255_v43 = vld [vmem:[%s4629_s21 + $0x7d0] sm:$0xff]  }
 0x11c   : > { %3809 = vmatpush3.bf16.msra.mxu1 %v4205_v44  ;;  %3788 = vmatprep.subr.bf16.mxu0 %v4206_v45  ;;  %v4256_v44 = vld [vmem:[%s4629_s21 + $0x710] sm:$0xff]  }
 0x11d   : > { %3810 = vmatprep.subr.bf16.mxu1 %v4207_v46  ;;  %v4257_v45 = vld [vmem:[%s4629_s21 + $0x790] sm:$0xff]   ;;  %v4258_v46 = vld [vmem:[%s4629_s21 + $0x748] sm:$0xff]  }
 0x11f   : > { %3789 = vmatpush3.bf16.msra.mxu0 %v4208_v47  ;;  %v4259_v47 = vld [vmem:[%s4629_s21 + $0x7c8] sm:$0xff]  }
 0x120   : > { %3811 = vmatpush3.bf16.msra.mxu1 %v4209_v48  ;;  %3790 = vmatprep.subr.bf16.mxu0 %v4210_v49  ;;  %v4260_v48 = vld [vmem:[%s4629_s21 + $0x708] sm:$0xff]  }
 0x121   : > { %3812 = vmatprep.subr.bf16.mxu1 %v4211_v50  ;;  %v4261_v49 = vld [vmem:[%s4629_s21 + $0x788] sm:$0xff]   ;;  %v4262_v50 = vld [vmem:[%s4629_s21 + $0x740] sm:$0xff]  }
 0x123   : > { %3791 = vmatpush3.bf16.msra.mxu0 %v4212_v51  ;;  %v4263_v51 = vld [vmem:[%s4629_s21 + $0x7c0] sm:$0xff]  }
 0x124   : > { %3813 = vmatpush3.bf16.msra.mxu1 %v4213_v52  ;;  %3792 = vmatprep.subr.bf16.mxu0 %v4214_v53  ;;  %v4264_v52 = vld [vmem:[%s4629_s21 + $0x700] sm:$0xff]  }
 0x125   : > { %3814 = vmatprep.subr.bf16.mxu1 %v4215_v54  ;;  %v4265_v53 = vld [vmem:[%s4629_s21 + $0x780] sm:$0xff]   ;;  %v263_v54 = vld [vmem:[%s4623_s24 + $0x70] sm:$0xff] }
 0x127   : > { %3793 = vmatpush3.bf16.msra.mxu0 %v4216_v55  ;;  %v3253_v55 = vcombine.low %v263_v54, %v263_v54 }
 0x128   : > { %3815 = vmatpush3.bf16.msra.mxu1 %v4217_v56  ;;  %3794 = vmatprep.subr.bf16.mxu0 %v4218_v57  ;;  %v3254_v56 = vcombine.high %v263_v54, %v263_v54  ;;  %v264_v57 = vld [vmem:[%s4623_s24 + $0x78] sm:$0xff] }
 0x129   : > { %3816 = vmatprep.subr.bf16.mxu1 %v4219_v58 }
 0x12b   : > { %3795 = vmatpush3.bf16.msra.mxu0 %v4220_v59 }
 0x12c   : > { %3817 = vmatpush3.bf16.msra.mxu1 %v4221_v60  ;;  %3796 = vmatprep.subr.bf16.mxu0 %v4222_v61  ;;  %v3255_v60 = vcombine.low %v264_v57, %v264_v57  ;;  %v3256_v61 = vcombine.high %v264_v57, %v264_v57 }
 0x12d   : > { %3818 = vmatprep.subr.bf16.mxu1 %v4223_v62 }
 0x12f   : > { %3797 = vmatpush3.bf16.msra.mxu0 %v4224_v63 }
 0x130   : > { %3819 = vmatpush3.bf16.msra.mxu1 %v4225_v0  ;;  %3798 = vmatprep.subr.bf16.mxu0 %v4226_v1 }
 0x131   : > { %3820 = vmatprep.subr.bf16.mxu1 %v4227_v2 }
 0x133   : > { %3799 = vmatpush3.bf16.msra.mxu0 %v4228_v3 }
 0x134   : > { %3821 = vmatpush3.bf16.msra.mxu1 %v4229_v4  ;;  %3828 = vmatprep.subr.bf16.mxu0 %v4234_v12 }
 0x135   : > { %3850 = vmatprep.subr.bf16.mxu1 %v4235_v14 }
 0x136   : > { %v3536_v7 = vpop.f32.mrf.mxu0  ;;  %2939 = vmatmul.mubr.bf16.vlgmr.msra.gmra.mxu0 %v3249_v9 }
 0x137   : > { %v3558_v8 = vpop.f32.mrf.mxu1  ;;  %2979 = vmatmul.mubr.bf16.vlgmr.msra.gmra.mxu1 %v3251_v11  ;;  %3829 = vmatpush3.bf16.msra.mxu0 %v4236_v17 }
 0x138   : > { %v3537_v15 = vpop.f32.mrf.mxu0  ;;  %3851 = vmatpush3.bf16.msra.mxu1 %v4237_v20  ;;  %3830 = vmatprep.subr.bf16.mxu0 %v4238_v24 }
 0x139   : > { %v3559_v16 = vpop.f32.mrf.mxu1  ;;  %v3538_v18 = vadd.f32 %v3537_v15, %v3536_v7  ;;  %3852 = vmatprep.subr.bf16.mxu1 %v4239_v25  ;;  %3018 = vmatprep.mubr.bf16.mxu0 %v3254_v56 }
 0x13a   : > { %v3560_v19 = vadd.f32 %v3559_v16, %v3558_v8  ;;  %v3539_v21 = vpop.f32.mrf.mxu0  ;;  %3058 = vmatprep.mubr.bf16.mxu1 %v3256_v61 }
 0x13b   : > { %v3561_v22 = vpop.f32.mrf.mxu1  ;;  %3831 = vmatpush3.bf16.msra.mxu0 %v4240_v28 }
 0x13c   : > { %v4884_v23 = vadd.f32 %v3560_v19, %v3538_v18  ;;  %v3540_v26 = vpop.f32.mrf.mxu0  ;;  %3853 = vmatpush3.bf16.msra.mxu1 %v4241_v29  ;;  %3832 = vmatprep.subr.bf16.mxu0 %v4242_v30 }
 0x13d   : > { %v3562_v27 = vpop.f32.mrf.mxu1  ;;  %3854 = vmatprep.subr.bf16.mxu1 %v4243_v31 }
 0x13f   : > { %3833 = vmatpush3.bf16.msra.mxu0 %v4244_v32 }
 0x140   : > { %3855 = vmatpush3.bf16.msra.mxu1 %v4245_v33  ;;  %3834 = vmatprep.subr.bf16.mxu0 %v4246_v34 }
 0x141   : > { %3856 = vmatprep.subr.bf16.mxu1 %v4247_v35 }
 0x143   : > { %3835 = vmatpush3.bf16.msra.mxu0 %v4248_v36 }
 0x144   : > { %3857 = vmatpush3.bf16.msra.mxu1 %v4249_v37  ;;  %3836 = vmatprep.subr.bf16.mxu0 %v4250_v38 }
 0x145   : > { %3858 = vmatprep.subr.bf16.mxu1 %v4251_v39 }
 0x147   : > { %3837 = vmatpush3.bf16.msra.mxu0 %v4252_v40 }
 0x148   : > { %3859 = vmatpush3.bf16.msra.mxu1 %v4253_v41  ;;  %3838 = vmatprep.subr.bf16.mxu0 %v4254_v42 }
 0x149   : > { %3860 = vmatprep.subr.bf16.mxu1 %v4255_v43 }
 0x14b   : > { %3839 = vmatpush3.bf16.msra.mxu0 %v4256_v44 }
 0x14c   : > { %3861 = vmatpush3.bf16.msra.mxu1 %v4257_v45  ;;  %3840 = vmatprep.subr.bf16.mxu0 %v4258_v46 }
 0x14d   : > { %3862 = vmatprep.subr.bf16.mxu1 %v4259_v47 }
 0x14f   : > { %3841 = vmatpush3.bf16.msra.mxu0 %v4260_v48 }
 0x150   : > { %3863 = vmatpush3.bf16.msra.mxu1 %v4261_v49  ;;  %3842 = vmatprep.subr.bf16.mxu0 %v4262_v50 }
 0x151   : > { %3864 = vmatprep.subr.bf16.mxu1 %v4263_v51 }
 0x153   : > { %3843 = vmatpush3.bf16.msra.mxu0 %v4264_v52 }
 0x154   : > { %3865 = vmatpush3.bf16.msra.mxu1 %v4265_v53 }
 0x156   : > { %v3580_v58 = vpop.f32.mrf.mxu0  ;;  %3019 = vmatmul.mubr.bf16.vlgmr.msra.gmra.mxu0 %v3253_v55 }
 0x157   : > { %v3602_v59 = vpop.f32.mrf.mxu1  ;;  %3059 = vmatmul.mubr.bf16.vlgmr.msra.gmra.mxu1 %v3255_v60 }
 0x158   : > { %v3581_v62 = vpop.f32.mrf.mxu0 }
 0x159   : > { %v3603_v63 = vpop.f32.mrf.mxu1  ;;  %v3582_v0 = vadd.f32 %v3581_v62, %v3580_v58 }
 0x15a   : > { %v3604_v1 = vadd.f32 %v3603_v63, %v3602_v59  ;;  %v3583_v2 = vpop.f32.mrf.mxu0 }
 0x15b   : > { %v3605_v3 = vpop.f32.mrf.mxu1  ;;  %v2541_v4 = vadd.f32 %v3582_v0, %v4884_v23 }
 0x15c   : > { %v3584_v5 = vpop.f32.mrf.mxu0 }
 0x15d   : > { %v3606_v6 = vpop.f32.mrf.mxu1  ;;  %v2581_v7 = vadd.f32 %v3604_v1, %v2541_v4 }
 0x176   : > { %v3624_v8 = vpop.f32.mrf.mxu0 }
 0x177   : > { %v3646_v9 = vpop.f32.mrf.mxu1 }
 0x178   : > { %v3625_v10 = vpop.f32.mrf.mxu0 }
 0x179   : > { %v3626_v11 = vadd.f32 %v3625_v10, %v3624_v8  ;;  %v3647_v12 = vpop.f32.mrf.mxu1 }
 0x17a   : > { %v3648_v13 = vadd.f32 %v3647_v12, %v3646_v9  ;;  %v3627_v14 = vpop.f32.mrf.mxu0 }
 0x17b   : > { %v2621_v15 = vadd.f32 %v3626_v11, %v2581_v7  ;;  %v3649_v16 = vpop.f32.mrf.mxu1 }
 0x17c   : > { %v3628_v17 = vpop.f32.mrf.mxu0 }
 0x17d   : > { %v2661_v18 = vadd.f32 %v3648_v13, %v2621_v15  ;;  %v3650_v19 = vpop.f32.mrf.mxu1  ;;  %v265_v13 = vld [vmem:[#allocation2] sm:$0xff] }
 0x196   : > { %v3668_v20 = vpop.f32.mrf.mxu0 }
 0x197   : > { %v3690_v21 = vpop.f32.mrf.mxu1 }
 0x198   : > { %v3669_v22 = vpop.f32.mrf.mxu0 }
 0x199   : > { %v3670_v24 = vadd.f32 %v3669_v22, %v3668_v20  ;;  %v3691_v23 = vpop.f32.mrf.mxu1 }
 0x19a   : > { %v3692_v25 = vadd.f32 %v3691_v23, %v3690_v21  ;;  %v3671_v26 = vpop.f32.mrf.mxu0 }
 0x19b   : > { %v2701_v27 = vadd.f32 %v3670_v24, %v2661_v18  ;;  %v3693_v28 = vpop.f32.mrf.mxu1 }
 0x19c   : > { %v3672_v29 = vpop.f32.mrf.mxu0 }
 0x19d   : > { %v2741_v30 = vadd.f32 %v3692_v25, %v2701_v27  ;;  %v3694_v31 = vpop.f32.mrf.mxu1 }
 0x1b6   : > { %v3712_v32 = vpop.f32.mrf.mxu0 }
 0x1b7   : > { %v3734_v33 = vpop.f32.mrf.mxu1 }
 0x1b8   : > { %v3713_v34 = vpop.f32.mrf.mxu0 }
 0x1b9   : > { %v3735_v35 = vpop.f32.mrf.mxu1  ;;  %v3714_v36 = vadd.f32 %v3713_v34, %v3712_v32 }
 0x1ba   : > { %v3736_v37 = vadd.f32 %v3735_v35, %v3734_v33  ;;  %v3715_v38 = vpop.f32.mrf.mxu0 }
 0x1bb   : > { %v3737_v39 = vpop.f32.mrf.mxu1  ;;  %v2781_v40 = vadd.f32 %v3714_v36, %v2741_v30 }
 0x1bc   : > { %v3716_v41 = vpop.f32.mrf.mxu0 }
 0x1bd   : > { %v3738_v42 = vpop.f32.mrf.mxu1  ;;  %v2821_v43 = vadd.f32 %v3736_v37, %v2781_v40 }
 0x1d6   : > { %v3756_v44 = vpop.f32.mrf.mxu0 }
 0x1d7   : > { %v3778_v45 = vpop.f32.mrf.mxu1 }
 0x1d8   : > { %v3757_v46 = vpop.f32.mrf.mxu0 }
 0x1d9   : > { %v3779_v47 = vpop.f32.mrf.mxu1  ;;  %v3758_v60 = vadd.f32 %v3757_v46, %v3756_v44 }
 0x1da   : > { %v3759_v48 = vpop.f32.mrf.mxu0  ;;  %v3780_v62 = vadd.f32 %v3779_v47, %v3778_v45 }
 0x1db   : > { %v3781_v49 = vpop.f32.mrf.mxu1  ;;  %v2861_v61 = vadd.f32 %v3758_v60, %v2821_v43 }
 0x1dc   : > { %v3760_v50 = vpop.f32.mrf.mxu0 }
 0x1dd   : > { %v3782_v51 = vpop.f32.mrf.mxu1  ;;  %v2901_v0 = vadd.f32 %v3780_v62, %v2861_v61 }
 0x1f6   : > { %v3800_v52 = vpop.f32.mrf.mxu0 }
 0x1f7   : > { %v3822_v53 = vpop.f32.mrf.mxu1 }
 0x1f8   : > { %v3801_v54 = vpop.f32.mrf.mxu0 }
 0x1f9   : > { %v3823_v55 = vpop.f32.mrf.mxu1  ;;  %v3802_v63 = vadd.f32 %v3801_v54, %v3800_v52 }
 0x1fa   : > { %v3803_v56 = vpop.f32.mrf.mxu0  ;;  %v3824_v2 = vadd.f32 %v3823_v55, %v3822_v53 }
 0x1fb   : > { %v3825_v57 = vpop.f32.mrf.mxu1  ;;  %v2941_v1 = vadd.f32 %v3802_v63, %v2901_v0 }
 0x1fc   : > { %v3804_v58 = vpop.f32.mrf.mxu0 }
 0x1fd   : > { %v3826_v59 = vpop.f32.mrf.mxu1  ;;  %v2981_v7 = vadd.f32 %v3824_v2, %v2941_v1 }
 0x216   : > { %v3844_v3 = vpop.f32.mrf.mxu0 }
 0x217   : > { %v3866_v4 = vpop.f32.mrf.mxu1 }
 0x218   : > { %v3845_v5 = vpop.f32.mrf.mxu0 }
 0x219   : > { %v3867_v6 = vpop.f32.mrf.mxu1  ;;  %v3846_v8 = vadd.f32 %v3845_v5, %v3844_v3 }
 0x21a   : > { %v3847_v9 = vpop.f32.mrf.mxu0  ;;  %v3868_v12 = vadd.f32 %v3867_v6, %v3866_v4 }
 0x21b   : > { %v3869_v10 = vpop.f32.mrf.mxu1  ;;  %v3021_v11 = vadd.f32 %v3846_v8, %v2981_v7 }
 0x21c   : > { %v3848_v14 = vpop.f32.mrf.mxu0 }
 0x21d   : > { %v3870_v15 = vpop.f32.mrf.mxu1  ;;  %v3061_v16 = vadd.f32 %v3868_v12, %v3021_v11  ;;  %3071 = sbr.rel (%p3513_p7) target bundleno = 554 (0x22a), region = 44 }
 0x21f   : > { %v3066_v17 = vadd.f32 %v3061_v16, %v265_v13 }
 0x221   : > { %3067 = vst [vmem:[#allocation2] sm:$0xff] %v3066_v17 }
 0x228   : > { %v3072_v18 = vld [vmem:[#allocation2] sm:$0xff] }
 0x229   : > { %3073 = vst [vmem:[%s236_s27] sm:$0xff] %v3072_v18 }
 0x22a PF: > { %s3515_s28 = sshll.u32 %s4438_s16, 7  ;;  %s3089_s23 = sshll.u32 %s236_s27, 4  ;;  %s3090_s23 = int_to_ptr.vmem [resolvable:$true] %s3089_s23 }
 0x22b   : > { %s3087_s5 = scalar_lea.hbm %s4979_s2, %s3515_s28  ;;  %s3075_s15 = scalar_lea.sflag [#allocation5], %s234_s4 }
 0x22c   : > { %s4326_s25 = scalar_lea.vmem %s3090_s23, 128  ;;  %s4457_s12 = smov [#allocation8]  }
 0x22d   : > { %p4327_p6 = scmp.ne.s32.totalorder %s3090_s23, %s4326_s25  ;;  %s4330_s26 = sshll.u32 %s4457_s12, 4  ;;  %s4331_s26 = int_to_ptr.vmem [resolvable:$false] %s4330_s26 }
 0x22e   : > { %s4332_s30 = scalar_lea.vmem %s4331_s26, 256  ;;  %p4333_p9 = scmp.lt.s32.totalorder %s3090_s23, %s4331_s26 }
 0x22f   : > { %p4328_p1 = pnand %p4327_p6, %p4566_p12  ;;  %p4334_p10 = scmp.lt.s32.totalorder %s4332_s30, %s4326_s25 }
 0x231   : > { %p4329_p8 = pneg %p4328_p1  ;;  %p4335_p5 = por %p4334_p10, %p4333_p9 }
 0x233   : > { %p4336_p11 = pnand %p4335_p5, %p4329_p8 }
 0x235   : > { %4339 = shalt.err (!%p4336_p11)
}
 0x236   : > { %s4340_s16 = scalar_lea.hbm %s3087_s5, 128  ;;  %s4344_s22 = scalar_lea.hbm %s4979_s2, 256 }
 0x237   : > { %p4341_p13 = scmp.ne.s32.totalorder %s3087_s5, %s4340_s16  ;;  %p4345_p3 = scmp.lt.s32.totalorder %s3087_s5, %s4979_s2 }
 0x238   : > { %p4346_p7 = scmp.lt.s32.totalorder %s4344_s22, %s4340_s16 }
 0x239   : > { %p4342_p4 = pnand %p4341_p13, %p4566_p12 }
 0x23a   : > { %p4347_p6 = por %p4346_p7, %p4345_p3 }
 0x23b   : > { %p4343_p0 = pneg %p4342_p4 }
 0x23d   : > { %p4348_p1 = pnand %p4347_p6, %p4343_p0 }
 0x23f   : > { %4351 = shalt.err (!%p4348_p1)
}
 0x240   : > { %3876 = dma.vmem_to_hbm [thread:$0]  (%p4566_p12), %s3090_s23, 128, %s3087_s5, %s3075_s15  }
 0x241 PF: > { %p3890_p8 = scmp.ge.s32.totalorder %s4450_s19, 2  ;;  %s3101_s18 = sand.u32 1, %s4410_s9  }
 0x242   : > { %s3102_s27 = scalar_lea.sflag [#allocation5], %s3101_s18 }
 0x243   : > { %p3886_p9 = pnand %p3890_p8, %p4578_p2 }
 0x245   : > { %p3887_p10 = pneg %p3886_p9 }
 0x247   : > { %4405 = dma.done.wait (%p3887_p10), %s3102_s27, 128  }
 0x248   : > { %4407 = vsyncadd (%p3887_p10), %s3102_s27, 4294967168  ;;  %s21_s19 = sadd.s32 1, %s4450_s19   ;;  %s4994_s16 = sld [smem:[#allocation12_spill]] }
 0x249   : > { %p18_p5 = scmp.ge.s32.totalorder %s21_s19, 6   ;;  %s4995_s8 = sld [smem:[#allocation13_spill]] }
 0x24a   : > { %s4996_s18 = sld [smem:[#allocation14_spill]]  ;;  %s4997_s9 = smov %s4414_s10 }
 0x24b   : > { %s4998_s10 = smov %s4418_s11  ;;  %s4999_s11 = smov %s4561_s6 }
 0x24c   : > { %s5000_s12 = smov %s4426_s13  ;;  %s5001_s13 = smov %s4430_s14 }
 0x24d   : > { %s5002_s14 = smov %s4564_s7  ;;  %s5003_s15 = smov %s4442_s17 }
 0x24e   :  { %20 = sbr.rel (!%p18_p5) target bundleno = 13 (0xd), region = 94 }
 0x24f   : > { %s5004_s17 = smov %s4995_s8 }
 0x253   :  { %3107 = vsyncpa [#allocation4], 1 }
 0x254   :  { %3109 = vsyncpa [#allocation4 + $0x1], 1 }
 0x255   :  { %3110 = vsyncpa [#allocation7], 1 }
 0x256   :  { %3112 = vsyncpa [#allocation7 + $0x1], 1 }
 0x257   :  { %3113 = vsyncpa [#allocation5], 1 }
 0x258   :  { %3115 = vsyncpa [#allocation5 + $0x1], 1 }

</bundles_post_ra>
